<compile_context>
chip_gen: v7x
topology: tpu7x:2x2x1
jax: 0.10.0
libtpu: 0.0.40
codegen_flags: <defaults>
</compile_context>

<pallas_src>
import functools

import jax
import jax.numpy as jnp
from jax import lax
from jax.experimental import pallas as pl
from jax.experimental.pallas import tpu as pltpu


def gnn_block_kernel(x_ref, idx_ref, ea_ref, w_ref, b_ref, o_ref):
    """One grid step = one group of G disjoint graphs.

    Shapes (Ng = G*N nodes, Eg = G*E edges, F = features):
      x_ref   (Ng, F)    node features, natural layout (no wrapper transpose)
      idx_ref (2, Eg)    int32 [src; dst] node ids, already group-offset
      ea_ref  (Eg, F)    edge features, natural layout
      w_ref   (3, F, F)  stacked [W_lin^T, W1^T, W2^T]
      b_ref   (3, F, 1)  stacked [b_lin, b1, b2] as columns
      o_ref   (Ng, F)    output, natural layout (aliased to x's HBM buffer)
    """
    x = x_ref[...]                                    # (Ng, F)
    ea = ea_ref[...]                                  # (Eg, F)
    idx = idx_ref[...]                                # (2, Eg) int32
    Ng = x.shape[0]
    Eg = ea.shape[0]

    w_linT = w_ref[0]; w1T = w_ref[1]; w2T = w_ref[2]   # (F, F), pre-transposed
    b_lin = b_ref[0]; b1 = b_ref[1]; b2 = b_ref[2]      # (F, 1) columns

    # Small in-kernel transpose (XLU, idle slot) instead of an XLA-side HBM
    # round trip around the kernel.
    xT = x.T                                            # (F, Ng) feature-major

    # --- single shared iota; both one-hots from the row-major (2, Eg) idx ---
    iota_ne = lax.broadcasted_iota(jnp.int32, (Ng, Eg), 0)
    onehot_src = (iota_ne == idx[0:1, :]).astype(jnp.float32)   # (Ng, Eg)
    onehot_dst = (iota_ne == idx[1:2, :]).astype(jnp.float32)   # (Ng, Eg)

    # --- GINEConv edge projection: (edge_attr @ W_lin + b)^T, rhs-transposed dot
    epT = lax.dot_general(w_linT, ea, (((1,), (1,)), ((), ())),
                          preferred_element_type=jnp.float32) + b_lin       # (F, Eg)

    # --- gather x_j = x[src] as a lane-dense MXU dot: (F,Ng) @ (Ng,Eg) ---
    x_srcT = jnp.dot(xT, onehot_src, preferred_element_type=jnp.float32)    # (F, Eg)

    # --- message = relu(x_j + lin(edge_attr)) ---
    msgT = jnp.maximum(x_srcT + epT, 0.0)                                   # (F, Eg)

    # --- scatter-mean over dst: contract the edge axis (rhs-transposed dots) ---
    aggT = lax.dot_general(msgT, onehot_dst, (((1,), (1,)), ((), ())),
                           preferred_element_type=jnp.float32)              # (F, Ng)
    cnt = lax.dot_general(jnp.ones((1, Eg), jnp.float32), onehot_dst,
                          (((1,), (1,)), ((), ())),
                          preferred_element_type=jnp.float32)               # (1, Ng)
    inv_cnt = pl.reciprocal(jnp.maximum(cnt, 1.0), approx=False)
    hT = aggT * inv_cnt + xT                          # + (1+eps)*x, eps = 0

    # --- MLP: Linear -> ReLU -> (Dropout p=0) -> Linear ---
    h1T = jnp.maximum(jnp.dot(w1T, hT, preferred_element_type=jnp.float32) + b1, 0.0)
    h2T = jnp.dot(w2T, h1T, preferred_element_type=jnp.float32) + b2        # (F, Ng)

    # --- block last_act ReLU + residual; store in the natural (Ng, F) layout ---
    o_ref[...] = x + jnp.maximum(h2T, 0.0).T


def _default_group_size(batch):
    """Graphs fused per grid step, per TPU generation (perf-review items 2-4).

    v5e / v6e: single TensorCore -> one big step (no per-step overhead, and at
    B=16 it makes Ng/Eg multiples of 256 for the 2x256^2 MXU).
    v7x (and unknown): keep >=2 steps so dimension_semantics=("parallel",)
    actually feeds both TensorCores.
    """
    try:
        kind = jax.devices()[0].device_kind.lower()
    except Exception:
        kind = ""
    single_tc = ("v5" in kind) or ("v6" in kind)
    if single_tc or (batch % 2 != 0):
        return batch
    return max(batch // 2, 1)


@functools.partial(jax.jit, static_argnames=("group_size",))
def _gnn_block(x, src, dst, edge_attr, params, *, group_size):
    B, N, F = x.shape
    E = src.shape[1]
    G = group_size
    assert B % G == 0, "batch must be divisible by group_size"
    NG = B // G
    Ng, Eg = G * N, G * E

    # No XLA-side transposes: only free reshapes of contiguous arrays.
    x_g = x.reshape(NG, Ng, F)
    ea_g = edge_attr.reshape(NG, Eg, F)

    # src/dst merged into one row-major (2, Eg) int32 operand per group
    # (avoids the lane-padded (Eg, 1) column DMA of the previous version).
    offs = (jnp.arange(G, dtype=jnp.int32) * N)[None, :, None]               # (1, G, 1)
    src_g = (src.reshape(NG, G, E).astype(jnp.int32) + offs).reshape(NG, Eg)
    dst_g = (dst.reshape(NG, G, E).astype(jnp.int32) + offs).reshape(NG, Eg)
    idx_g = jnp.stack([src_g, dst_g], axis=1)                                # (NG, 2, Eg)

    # 3 weights / 3 biases folded into 2 small constant-index operands.
    # Pallas skips the HBM->VMEM copy when the block index is unchanged.
    w_stack = jnp.stack([params["w_lin"].T, params["w1"].T, params["w2"].T])        # (3,F,F)
    b_stack = jnp.stack([params["b_lin"], params["b1"], params["b2"]])[..., None]   # (3,F,1)

    out = pl.pallas_call(
        gnn_block_kernel,
        out_shape=jax.ShapeDtypeStruct((NG, Ng, F), jnp.float32),
        grid=(NG,),
        in_specs=[
            pl.BlockSpec((None, Ng, F), lambda g: (g, 0, 0)),   # x, natural layout
            pl.BlockSpec((None, 2, Eg), lambda g: (g, 0, 0)),   # [src; dst] row-major
            pl.BlockSpec((None, Eg, F), lambda g: (g, 0, 0)),   # edge_attr, natural
            pl.BlockSpec((3, F, F), lambda g: (0, 0, 0)),       # stacked weights
            pl.BlockSpec((3, F, 1), lambda g: (0, 0, 0)),       # stacked biases
        ],
        out_specs=pl.BlockSpec((None, Ng, F), lambda g: (g, 0, 0)),
        compiler_params=pltpu.CompilerParams(
            dimension_semantics=("parallel",)),                 # both TCs on v7x
        input_output_aliases={0: 0},                            # x buffer -> out
    )(x_g, idx_g, ea_g, w_stack, b_stack)

    return out.reshape(B, N, F)


def gnn_block(x, src, dst, edge_attr, params, *, group_size=None):
    if group_size is None:
        group_size = _default_group_size(x.shape[0])
    return _gnn_block(x, src, dst, edge_attr, params, group_size=group_size)


def _glorot(key, f_in, f_out):
    lim = (6.0 / (f_in + f_out)) ** 0.5
    return jax.random.uniform(key, (f_in, f_out), jnp.float32, -lim, lim)


def _reference_single(x, src, dst, ea, p):
    # Pure-JAX reference of the same per-graph forward pass.
    N, F = x.shape
    ep = ea @ p["w_lin"] + p["b_lin"]
    msg = jnp.maximum(x[src] + ep, 0.0)
    agg = jnp.zeros((N, F), jnp.float32).at[dst].add(msg)
    cnt = jnp.zeros((N, 1), jnp.float32).at[dst].add(1.0)
    h = agg / jnp.maximum(cnt, 1.0) + x
    h1 = jnp.maximum(h @ p["w1"] + p["b1"], 0.0)
    h2 = h1 @ p["w2"] + p["b2"]
    return x + jnp.maximum(h2, 0.0)


if __name__ == "__main__":
    B, N, E, F = 16, 16, 48, 32   # graphs, nodes/graph, edges/graph, features

    key = jax.random.PRNGKey(0)
    k = jax.random.split(key, 8)

    x = jax.random.normal(k[0], (B, N, F), jnp.float32)
    src = jax.random.randint(k[1], (B, E), 0, N, jnp.int32)   # precondition: in [0, N)
    dst = jax.random.randint(k[2], (B, E), 0, N, jnp.int32)
    edge_attr = jax.random.normal(k[3], (B, E, F), jnp.float32)

    # Deterministic params: glorot-uniform weights, zero biases (as in the module).
    params = {
        "w_lin": _glorot(k[4], F, F),
        "b_lin": jnp.zeros((F,), jnp.float32),
        "w1": _glorot(k[5], F, F),
        "b1": jnp.zeros((F,), jnp.float32),
        "w2": _glorot(k[6], F, F),
        "b2": jnp.zeros((F,), jnp.float32),
    }

    out = gnn_block(x, src, dst, edge_attr, params)   # group size auto-picked per chip
    out = jax.block_until_ready(out)

    ref = jax.vmap(lambda xb, sb, db, eb: _reference_single(xb, sb, db, eb, params))(
        x, src, dst, edge_attr)

    assert out.shape == (B, N, F)
    assert jnp.allclose(out, ref, atol=1e-4, rtol=1e-4), float(jnp.max(jnp.abs(out - ref)))

    print("KERNEL_OK")
</pallas_src>

<mosaic_0001>
module attributes {stable_mosaic.version = 11 : i64} {
  func.func @gnn_block_kernel(%arg0: i32, %arg1: memref<1x128x32xf32, #tpu.memory_space<vmem>>, %arg2: memref<1x2x384xi32, #tpu.memory_space<vmem>>, %arg3: memref<1x384x32xf32, #tpu.memory_space<vmem>>, %arg4: memref<3x32x32xf32, #tpu.memory_space<vmem>>, %arg5: memref<3x32x1xf32, #tpu.memory_space<vmem>>, %arg6: memref<1x128x32xf32, #tpu.memory_space<vmem>>) attributes {dimension_semantics = [#tpu.dimension_semantics<parallel>], iteration_bounds = array<i64: 2>, scalar_prefetch = 0 : i64, scratch_operands = 0 : i64, tpu.core_type = #tpu.core_type<tc>, window_params = [{transform_indices = @transform_0, window_bounds = array<i64: 1, 128, 32>}, {transform_indices = @transform_1, window_bounds = array<i64: 1, 2, 384>}, {transform_indices = @transform_2, window_bounds = array<i64: 1, 384, 32>}, {pipeline_mode = #tpu.pipeline_mode<synchronous>, transform_indices = @transform_3, window_bounds = array<i64: 3, 32, 32>}, {pipeline_mode = #tpu.pipeline_mode<synchronous>, transform_indices = @transform_4, window_bounds = array<i64: 3, 32, 1>}, {transform_indices = @transform_5, window_bounds = array<i64: 1, 128, 32>}]} {
    %c0 = arith.constant 0 : index
    %c0_0 = arith.constant 0 : index
    %c0_1 = arith.constant 0 : index
    %0 = vector.load %arg1[%c0, %c0_0, %c0_1] : memref<1x128x32xf32, #tpu.memory_space<vmem>>, vector<1x128x32xf32>
    %1 = vector.shape_cast %0 : vector<1x128x32xf32> to vector<128x32xf32>
    %c0_2 = arith.constant 0 : index
    %c0_3 = arith.constant 0 : index
    %c0_4 = arith.constant 0 : index
    %2 = vector.load %arg3[%c0_2, %c0_3, %c0_4] : memref<1x384x32xf32, #tpu.memory_space<vmem>>, vector<1x384x32xf32>
    %3 = vector.shape_cast %2 : vector<1x384x32xf32> to vector<384x32xf32>
    %c0_5 = arith.constant 0 : index
    %c0_6 = arith.constant 0 : index
    %c0_7 = arith.constant 0 : index
    %4 = vector.load %arg2[%c0_5, %c0_6, %c0_7] : memref<1x2x384xi32, #tpu.memory_space<vmem>>, vector<1x2x384xi32>
    %5 = vector.shape_cast %4 : vector<1x2x384xi32> to vector<2x384xi32>
    %c0_8 = arith.constant 0 : index
    %c0_9 = arith.constant 0 : index
    %c0_10 = arith.constant 0 : index
    %6 = vector.load %arg4[%c0_8, %c0_9, %c0_10] : memref<3x32x32xf32, #tpu.memory_space<vmem>>, vector<1x32x32xf32>
    %7 = vector.shape_cast %6 : vector<1x32x32xf32> to vector<32x32xf32>
    %c1 = arith.constant 1 : index
    %c0_11 = arith.constant 0 : index
    %c0_12 = arith.constant 0 : index
    %8 = vector.load %arg4[%c1, %c0_11, %c0_12] : memref<3x32x32xf32, #tpu.memory_space<vmem>>, vector<1x32x32xf32>
    %9 = vector.shape_cast %8 : vector<1x32x32xf32> to vector<32x32xf32>
    %c2 = arith.constant 2 : index
    %c0_13 = arith.constant 0 : index
    %c0_14 = arith.constant 0 : index
    %10 = vector.load %arg4[%c2, %c0_13, %c0_14] : memref<3x32x32xf32, #tpu.memory_space<vmem>>, vector<1x32x32xf32>
    %11 = vector.shape_cast %10 : vector<1x32x32xf32> to vector<32x32xf32>
    %c0_15 = arith.constant 0 : index
    %c0_16 = arith.constant 0 : index
    %c0_17 = arith.constant 0 : index
    %12 = vector.load %arg5[%c0_15, %c0_16, %c0_17] : memref<3x32x1xf32, #tpu.memory_space<vmem>>, vector<1x32x1xf32>
    %13 = vector.shape_cast %12 : vector<1x32x1xf32> to vector<32x1xf32>
    %c1_18 = arith.constant 1 : index
    %c0_19 = arith.constant 0 : index
    %c0_20 = arith.constant 0 : index
    %14 = vector.load %arg5[%c1_18, %c0_19, %c0_20] : memref<3x32x1xf32, #tpu.memory_space<vmem>>, vector<1x32x1xf32>
    %15 = vector.shape_cast %14 : vector<1x32x1xf32> to vector<32x1xf32>
    %c2_21 = arith.constant 2 : index
    %c0_22 = arith.constant 0 : index
    %c0_23 = arith.constant 0 : index
    %16 = vector.load %arg5[%c2_21, %c0_22, %c0_23] : memref<3x32x1xf32, #tpu.memory_space<vmem>>, vector<1x32x1xf32>
    %17 = vector.shape_cast %16 : vector<1x32x1xf32> to vector<32x1xf32>
    %18 = tpu.transpose %1, [1, 0] : vector<128x32xf32> -> vector<32x128xf32>
    %19 = tpu.iota {dimensions = array<i32: 0>} : vector<128x384xi32>
    %20 = vector.extract_strided_slice %5 {offsets = [0, 0], sizes = [1, 384], strides = [1, 1]} : vector<2x384xi32> to vector<1x384xi32>
    %21 = vector.broadcast %20 : vector<1x384xi32> to vector<128x384xi32>
    %22 = arith.cmpi eq, %19, %21 : vector<128x384xi32>
    %23 = arith.extui %22 : vector<128x384xi1> to vector<128x384xi32>
    %24 = arith.sitofp %23 : vector<128x384xi32> to vector<128x384xf32>
    %25 = vector.extract_strided_slice %5 {offsets = [1, 0], sizes = [1, 384], strides = [1, 1]} : vector<2x384xi32> to vector<1x384xi32>
    %26 = vector.broadcast %25 : vector<1x384xi32> to vector<128x384xi32>
    %27 = arith.cmpi eq, %19, %26 : vector<128x384xi32>
    %28 = arith.extui %27 : vector<128x384xi1> to vector<128x384xi32>
    %29 = arith.sitofp %28 : vector<128x384xi32> to vector<128x384xf32>
    %cst = arith.constant dense<0.000000e+00> : vector<32x384xf32>
    %30 = tpu.matmul %7, %3, %cst {dimension_numbers = #tpu.dot_dimension_numbers<[1], [1], [0], [0], [0, 0, 1, 0], [], []>} : vector<32x32xf32>, vector<384x32xf32>, vector<32x384xf32> -> vector<32x384xf32>
    %31 = vector.broadcast %13 : vector<32x1xf32> to vector<32x384xf32>
    %32 = arith.addf %30, %31 : vector<32x384xf32>
    %cst_24 = arith.constant dense<0.000000e+00> : vector<32x384xf32>
    %33 = tpu.matmul %18, %24, %cst_24 {dimension_numbers = #tpu.dot_dimension_numbers<[1], [0], [0], [1], [0, 0, 1, 1], [], []>} : vector<32x128xf32>, vector<128x384xf32>, vector<32x384xf32> -> vector<32x384xf32>
    %34 = arith.addf %33, %32 : vector<32x384xf32>
    %cst_25 = arith.constant 0.000000e+00 : f32
    %35 = vector.broadcast %cst_25 : f32 to vector<32x384xf32>
    %36 = arith.maximumf %34, %35 : vector<32x384xf32>
    %cst_26 = arith.constant dense<0.000000e+00> : vector<32x128xf32>
    %37 = tpu.matmul %36, %29, %cst_26 {dimension_numbers = #tpu.dot_dimension_numbers<[1], [1], [0], [0], [0, 0, 1, 0], [], []>} : vector<32x384xf32>, vector<128x384xf32>, vector<32x128xf32> -> vector<32x128xf32>
    %cst_27 = arith.constant 1.000000e+00 : f32
    %38 = vector.broadcast %cst_27 : f32 to vector<1x384xf32>
    %cst_28 = arith.constant dense<0.000000e+00> : vector<1x128xf32>
    %39 = tpu.matmul %38, %29, %cst_28 {dimension_numbers = #tpu.dot_dimension_numbers<[1], [1], [0], [0], [0, 0, 1, 0], [], []>} : vector<1x384xf32>, vector<128x384xf32>, vector<1x128xf32> -> vector<1x128xf32>
    %cst_29 = arith.constant 1.000000e+00 : f32
    %40 = vector.broadcast %cst_29 : f32 to vector<1x128xf32>
    %41 = arith.maximumf %39, %40 : vector<1x128xf32>
    %42 = tpu.reciprocal %41 : vector<1x128xf32> -> vector<1x128xf32>
    %43 = vector.broadcast %42 : vector<1x128xf32> to vector<32x128xf32>
    %44 = arith.mulf %37, %43 : vector<32x128xf32>
    %45 = arith.addf %44, %18 : vector<32x128xf32>
    %cst_30 = arith.constant dense<0.000000e+00> : vector<32x128xf32>
    %46 = tpu.matmul %9, %45, %cst_30 {dimension_numbers = #tpu.dot_dimension_numbers<[1], [0], [0], [1], [0, 0, 1, 1], [], []>} : vector<32x32xf32>, vector<32x128xf32>, vector<32x128xf32> -> vector<32x128xf32>
    %47 = vector.broadcast %15 : vector<32x1xf32> to vector<32x128xf32>
    %48 = arith.addf %46, %47 : vector<32x128xf32>
    %cst_31 = arith.constant 0.000000e+00 : f32
    %49 = vector.broadcast %cst_31 : f32 to vector<32x128xf32>
    %50 = arith.maximumf %48, %49 : vector<32x128xf32>
    %cst_32 = arith.constant dense<0.000000e+00> : vector<32x128xf32>
    %51 = tpu.matmul %11, %50, %cst_32 {dimension_numbers = #tpu.dot_dimension_numbers<[1], [0], [0], [1], [0, 0, 1, 1], [], []>} : vector<32x32xf32>, vector<32x128xf32>, vector<32x128xf32> -> vector<32x128xf32>
    %52 = vector.broadcast %17 : vector<32x1xf32> to vector<32x128xf32>
    %53 = arith.addf %51, %52 : vector<32x128xf32>
    %cst_33 = arith.constant 0.000000e+00 : f32
    %54 = vector.broadcast %cst_33 : f32 to vector<32x128xf32>
    %55 = arith.maximumf %53, %54 : vector<32x128xf32>
    %56 = tpu.transpose %55, [1, 0] : vector<32x128xf32> -> vector<128x32xf32>
    %57 = arith.addf %1, %56 : vector<128x32xf32>
    %c0_34 = arith.constant 0 : index
    %c0_35 = arith.constant 0 : index
    %c0_36 = arith.constant 0 : index
    %58 = vector.load %arg6[%c0_34, %c0_35, %c0_36] : memref<1x128x32xf32, #tpu.memory_space<vmem>>, vector<1x128x32xf32>
    %59 = vector.shape_cast %58 : vector<1x128x32xf32> to vector<128x32xf32>
    %60 = vector.shape_cast %57 : vector<128x32xf32> to vector<1x128x32xf32>
    tpu.vector_store %arg6[%c0_34, %c0_35, %c0_36], %60 {strides = array<i32>} : memref<1x128x32xf32, #tpu.memory_space<vmem>>, vector<1x128x32xf32>,
    return
  }
  func.func @transform_0(%arg0: i32) -> (i32, i32, i32) {
    %c0_i32 = arith.constant 0 : i32
    %c0_i32_0 = arith.constant 0 : i32
    %c0_i32_1 = arith.constant 0 : i32
    return %arg0, %c0_i32, %c0_i32_0 : i32, i32, i32
  }
  func.func @transform_1(%arg0: i32) -> (i32, i32, i32) {
    %c0_i32 = arith.constant 0 : i32
    %c0_i32_0 = arith.constant 0 : i32
    %c0_i32_1 = arith.constant 0 : i32
    return %arg0, %c0_i32, %c0_i32_0 : i32, i32, i32
  }
  func.func @transform_2(%arg0: i32) -> (i32, i32, i32) {
    %c0_i32 = arith.constant 0 : i32
    %c0_i32_0 = arith.constant 0 : i32
    %c0_i32_1 = arith.constant 0 : i32
    return %arg0, %c0_i32, %c0_i32_0 : i32, i32, i32
  }
  func.func @transform_3(%arg0: i32) -> (i32, i32, i32) {
    %c0_i32 = arith.constant 0 : i32
    %c0_i32_0 = arith.constant 0 : i32
    %c0_i32_1 = arith.constant 0 : i32
    %c0_i32_2 = arith.constant 0 : i32
    return %c0_i32, %c0_i32_0, %c0_i32_1 : i32, i32, i32
  }
  func.func @transform_4(%arg0: i32) -> (i32, i32, i32) {
    %c0_i32 = arith.constant 0 : i32
    %c0_i32_0 = arith.constant 0 : i32
    %c0_i32_1 = arith.constant 0 : i32
    %c0_i32_2 = arith.constant 0 : i32
    return %c0_i32, %c0_i32_0, %c0_i32_1 : i32, i32, i32
  }
  func.func @transform_5(%arg0: i32) -> (i32, i32, i32) {
    %c0_i32 = arith.constant 0 : i32
    %c0_i32_0 = arith.constant 0 : i32
    %c0_i32_1 = arith.constant 0 : i32
    return %arg0, %c0_i32, %c0_i32_0 : i32, i32, i32
  }
}

</mosaic_0001>

<bundles_post_ra>
// kernel: _gnn_block.1
= control target key start
LH: loop header
LB: loop body
LE: loop exit
PB: predicated region body
PF: predicated region fallthrough
CT: control target
= control target key end

     0   :  { %s3021_s18 = smov 0   ;;  %s4157_s0 = inlined_call_operand.vmem [shape: f32[2,128,32], index: 0, kind: input, shape index: {}, may-alias: {0,5}]   ;;  %s4158_s1 = inlined_call_operand.vmem [shape: s32[2,2,384], index: 1, kind: input, shape index: {}]   ;;  %s4159_s2 = inlined_call_operand.vmem [shape: f32[2,384,32], index: 2, kind: input, shape index: {}]   ;;  %s4160_s3 = inlined_call_operand.vmem [shape: f32[3,32,32], index: 3, kind: input, shape index: {}]   ;;  %s4161_s4 = inlined_call_operand.vmem [shape: f32[3,32,1], index: 4, kind: input, shape index: {}]   ;;  %s4162_s5 = inlined_call_operand.vmem [shape: f32[2,128,32], index: 5, kind: output, shape index: {}, may-alias: {0,5}]  }
   0x1 LB: > { %s1989_s19 = sadd.s32 4294967295, %s2983_s18   ;;  %p1993_p0 = scmp.ge.s32.totalorder %s2983_s18, 1  ;;  %s2983_s18 = sphi %s3021_s18, %s15_s18  }
   0x2   : > { %p207_p1 = scmp.lt.s32.totalorder %s2983_s18, 3 }
   0x4   : > { %p208_p2 = pnand %p1993_p0, %p207_p1 }
   0x6   : > { %211 = sbr.rel (%p208_p2) target bundleno = 1371 (0x55b), region = 40 }
   0xd   : > { %p245_p3 = scmp.lt.s32.totalorder %s1989_s19, 1  ;;  %vm4163_vm0 = vcmask 261120   ;;  %v3032_v0 = vld [vmem:[%s4160_s3] sm:$0xff]  ;;  %v4175_v1 = vmov 0.0   ;;  %v390_v19 = vlaneseq  ;;  %v4176_v53 = vmov 1.0|1.0  }
   0xe   : > { %2356 = vmatprep.mubr.msk.f32.mxu1 %vm4163_vm0, %v3032_v0  ;;  %1158 = vmatprep.mubr.f32.mxu0 %v4175_v1  ;;  %vm3056_vm1 = vmpackc.low %vm4163_vm0, %vm4163_vm0 }
   0xf   : > { %s4324_s19 = smov (!%p245_p3, %s1989_s19), 1  ;;  %v3088_v23 = vshrl.u32 %v390_v19, 7 }
  0x10   : > { %s2322_s22 = sshll.u32 %s4324_s19, 7  ;;  %s2957_s23 = smul.u32 384, %s4324_s19 }
  0x11   : > { %s3046_s26 = scalar_lea.vmem %s4157_s0, %s2322_s22  ;;  %s2956_s30 = smul.u32 6, %s4324_s19  ;;  %v3106_v29 = vsub.s32 0, %v3088_v23  ;;  %v413_v30 = vsub.s32 2, %v3088_v23  ;;  %v417_v35 = vsub.s32 4, %v3088_v23  ;;  %v3117_v36 = vadd.s32 8, %v3088_v23 }
  0x12   : > { %s3051_s29 = scalar_lea.vmem %s4159_s2, %s2957_s23  ;;  %v265_v2 = vld [vmem:[%s3046_s26] sm:$0xff]  ;;  %v3061_v4 = vld [vmem:[%s3046_s26 + $0x8] sm:$0xff]  ;;  %v3075_v14 = vld [vmem:[%s3046_s26 + $0x10] sm:$0xff]  ;;  %v3123_v39 = vadd.s32 16, %v3088_v23  ;;  %v3126_v40 = vadd.s32 24, %v3088_v23  ;;  %v3138_v43 = vadd.s32 32, %v3088_v23  ;;  %s4104_s16 = scalar_lea.vmem %s4162_s5, %s2322_s22 }
  0x13   : > { %358 = vxpose.xlu0.b32.start [1/16] (narrow) %v265_v2, 32  ;;  %v297_v5 = vld [vmem:[%s3051_s29 + $0x80] sm:$0xff]  ;;  %v298_v6 = vld [vmem:[%s3051_s29 + $0x88] sm:$0xff]  ;;  %v299_v10 = vld [vmem:[%s3051_s29 + $0x90] sm:$0xff]  ;;  %s254_s8 = scalar_lea.vmem %s4158_s1, %s2956_s30  ;;  %v3141_v44 = vadd.s32 40, %v3088_v23  ;;  %v3151_v48 = vadd.s32 48, %v3088_v23 }
  0x14   : > { %v281_v7 = vld [vmem:[%s3051_s29] sm:$0xff]  ;;  %v2634_v8 = vpack.c.bf16 %v298_v6, %v297_v5  ;;  %v282_v9 = vld [vmem:[%s3051_s29 + $0x8] sm:$0xff]  ;;  %v300_v11 = vld [vmem:[%s3051_s29 + $0x98] sm:$0xff]  ;;  %v3179_v54 = vadd.s32 56, %v3088_v23  ;;  %v3211_v59 = vadd.s32 64, %v3088_v23  ;;  %v3214_v60 = vadd.s32 72, %v3088_v23 }
  0x15   : > { %v2637_v12 = vpack.c.bf16 %v282_v9, %v281_v7  ;;  %v2640_v13 = vpack.c.bf16 %v300_v11, %v299_v10  ;;  %v283_v15 = vld [vmem:[%s3051_s29 + $0x10] sm:$0xff]  ;;  %v284_v16 = vld [vmem:[%s3051_s29 + $0x18] sm:$0xff]  ;;  %v301_v17 = vld [vmem:[%s3051_s29 + $0xa0] sm:$0xff]  ;;  %v3238_v6 = vadd.s32 80, %v3088_v23  ;;  %v3241_v7 = vadd.s32 88, %v3088_v23 }
  0x16   : > { %2636 = vmatprep.subr.msk.bf16.mxu1 %vm3056_vm1, %v2634_v8  ;;  %v302_v18 = vld [vmem:[%s3051_s29 + $0xa8] sm:$0xff]  ;;  %v2643_v20 = vpack.c.bf16 %v284_v16, %v283_v15  ;;  %v3085_v21 = vld [vmem:[%s3046_s26 + $0x18] sm:$0xff]  ;;  %v3094_v24 = vld [vmem:[%s3046_s26 + $0x20] sm:$0xff]  ;;  %v3292_v15 = vadd.s32 104, %v3088_v23 }
  0x17   : > { %2639 = vmatpush3.bf16.xpose.msk.msra.mxu1 %vm3056_vm1, %v2637_v12  ;;  %359 = vxpose.xlu0.b32.cont [2/16] (narrow) %v3061_v4, 32  ;;  %v2646_v22 = vpack.c.bf16 %v302_v18, %v301_v17  ;;  %v285_v25 = vld [vmem:[%s3051_s29 + $0x20] sm:$0xff]  ;;  %v286_v26 = vld [vmem:[%s3051_s29 + $0x28] sm:$0xff]  ;;  %v303_v27 = vld [vmem:[%s3051_s29 + $0xb0] sm:$0xff] }
  0x18   : > { %2642 = vmatprep.subr.msk.bf16.mxu1 %vm3056_vm1, %v2640_v13  ;;  %v304_v28 = vld [vmem:[%s3051_s29 + $0xb8] sm:$0xff]  ;;  %v2649_v31 = vpack.c.bf16 %v286_v26, %v285_v25  ;;  %v3111_v32 = vld [vmem:[%s3046_s26 + $0x28] sm:$0xff]  ;;  %v3113_v34 = vld [vmem:[%s254_s8] sm:$0x3f]  ;;  %v3289_v13 = vadd.s32 96, %v3088_v23  ;;  %v3324_v25 = vadd.s32 112, %v3088_v23 }
  0x19   : > { %v2652_v33 = vpack.c.bf16 %v304_v28, %v303_v27  ;;  %v414_v37 = vrot.slane %v3113_v34, %v413_v30  ;;  %v410_v38 = vrot.slane %v3113_v34, %v3106_v29  ;;  %v3144_v45 = vld [vmem:[%s3046_s26 + $0x30] sm:$0xff]  ;;  %v288_v47 = vld [vmem:[%s3051_s29 + $0x38] sm:$0xff]  ;;  %v418_v49 = vrot.slane %v3113_v34, %v417_v35  ;;  %v305_v50 = vld [vmem:[%s3051_s29 + $0xc0] sm:$0xff] }
  0x1a   : > { %v287_v46 = vld [vmem:[%s3051_s29 + $0x30] sm:$0xff]  ;;  %v306_v51 = vld [vmem:[%s3051_s29 + $0xc8] sm:$0xff]  ;;  %v3182_v55 = vld [vmem:[%s3046_s26 + $0x38] sm:$0xff]  ;;  %v3327_v26 = vadd.s32 120, %v3088_v23  ;;  %v2987_v27 = vmov 0  }
  0x1b   : > { %360 = vxpose.xlu0.b32.cont [3/16] (narrow) %v3075_v14, 32  ;;  %v3132_v41 = vrot.slane %v414_v37, %v3106_v29  ;;  %v3135_v42 = vrot.slane %v410_v38, %v3106_v29  ;;  %v2655_v52 = vpack.c.bf16 %v288_v47, %v287_v46  ;;  %v2658_v56 = vpack.c.bf16 %v306_v51, %v305_v50  ;;  %v3217_v61 = vld [vmem:[%s3046_s26 + $0x40] sm:$0xff]  ;;  %v290_v63 = vld [vmem:[%s3051_s29 + $0x48] sm:$0xff]  ;;  %v307_v2 = vld [vmem:[%s3051_s29 + $0xd0] sm:$0xff] }
  0x1c   : > { %v3201_v58 = vrot.slane %v418_v49, %v3106_v29  ;;  %v289_v62 = vld [vmem:[%s3051_s29 + $0x40] sm:$0xff]  ;;  %v308_v5 = vld [vmem:[%s3051_s29 + $0xd8] sm:$0xff]  ;;  %v3263_v9 = vld [vmem:[%s3046_s26 + $0x48] sm:$0xff]  ;;  %2972 = vset.pattern.permute.xlu1 %v2987_v27 }
  0x1d   : > { %vm432_vm2 = vcmp.eq.s32.totalorder %v3088_v23, %v3132_v41  ;;  %vm435_vm3 = vcmp.eq.s32.totalorder %v3117_v36, %v3132_v41  ;;  %vm431_vm4 = vcmp.eq.s32.totalorder %v3088_v23, %v3135_v42  ;;  %vm434_vm5 = vcmp.eq.s32.totalorder %v3117_v36, %v3135_v42  ;;  %4189 = vst [vmem:[#allocation2_spill] sm:$0xff] %v3263_v9  ;;  %v3286_v12 = vld [vmem:[%s3046_s26 + $0x50] sm:$0xff]  ;;  %v292_v17 = vld [vmem:[%s3051_s29 + $0x58] sm:$0xff]  ;;  %v309_v19 = vld [vmem:[%s3051_s29 + $0xe0] sm:$0xff] }
  0x1e   : > { %vm2730_vm6 = vmpackc.low %vm435_vm3, %vm432_vm2  ;;  %vm438_vm7 = vcmp.eq.s32.totalorder %v3123_v39, %v3132_v41  ;;  %vm441_vm8 = vcmp.eq.s32.totalorder %v3126_v40, %v3132_v41  ;;  %vm437_vm9 = vcmp.eq.s32.totalorder %v3123_v39, %v3135_v42  ;;  %vm440_vm10 = vcmp.eq.s32.totalorder %v3126_v40, %v3135_v42  ;;  %4192 = vst [vmem:[#allocation3_spill] sm:$0xff] %v3286_v12  ;;  %v291_v16 = vld [vmem:[%s3051_s29 + $0x50] sm:$0xff]  ;;  %v344_v30 = vld [vmem:[%s4161_s4] sm:$0xff] }
  0x1f   : > { %2645 = vmatpush3.bf16.xpose.msk.msra.mxu1 %vm3056_vm1, %v2643_v20  ;;  %361 = vxpose.xlu0.b32.cont [4/16] (narrow) %v3085_v21, 32  ;;  %vm2732_vm11 = vmpackc.low %vm434_vm5, %vm431_vm4  ;;  %vm444_vm12 = vcmp.eq.s32.totalorder %v3138_v43, %v3132_v41  ;;  %vm447_vm13 = vcmp.eq.s32.totalorder %v3141_v44, %v3132_v41  ;;  %vm443_vm3 = vcmp.eq.s32.totalorder %v3138_v43, %v3135_v42  ;;  %v310_v20 = vld [vmem:[%s3051_s29 + $0xe8] sm:$0xff]  ;;  %v3367_v38 = vld [vmem:[%s3046_s26 + $0x58] sm:$0xff] }
  0x20   : > { %2648 = vmatprep.subr.msk.bf16.mxu1 %vm3056_vm1, %v2646_v22  ;;  %2731 = vmatprep.subr.msk.bf16.mxu0 %vm2730_vm6, %v4176_v53  ;;  %vm2734_vm14 = vmpackc.low %vm441_vm8, %vm438_vm7  ;;  %vm446_vm4 = vcmp.eq.s32.totalorder %v3141_v44, %v3135_v42  ;;  %vm450_vm5 = vcmp.eq.s32.totalorder %v3151_v48, %v3132_v41  ;;  %vm453_vm6 = vcmp.eq.s32.totalorder %v3179_v54, %v3132_v41  ;;  %v3410_v57 = vld [vmem:[%s3046_s26 + $0x60] sm:$0xff]  ;;  %v3489_v18 = vld [vmem:[%s3046_s26 + $0x68] sm:$0xff]  ;;  %v4218_v22 = vmov 0 }
  0x21   : > { %2733 = vmatpush1.bf16.msk.msra.mxu0 %vm2732_vm11, %v4176_v53  ;;  %vm2736_vm15 = vmpackc.low %vm440_vm10, %vm437_vm9  ;;  %vm449_vm8 = vcmp.eq.s32.totalorder %v3151_v48, %v3135_v42  ;;  %vm452_vm10 = vcmp.eq.s32.totalorder %v3179_v54, %v3135_v42  ;;  %vm436_vm11 = vcmp.eq.s32.totalorder %v3117_v36, %v3201_v58  ;;  %v2661_v8 = vpack.c.bf16 %v290_v63, %v289_v62  ;;  %v293_v63 = vld [vmem:[%s3051_s29 + $0x60] sm:$0xff]  ;;  %v314_v50 = vld [vmem:[%s3051_s29 + $0x108] sm:$0xff] }
  0x22   : > { %2735 = vmatprep.subr.msk.bf16.mxu0 %vm2734_vm14, %v4176_v53  ;;  %vm3192_vm2 = vmpackc.low %vm447_vm13, %vm444_vm12  ;;  %vm439_vm12 = vcmp.eq.s32.totalorder %v3123_v39, %v3201_v58  ;;  %vm442_vm13 = vcmp.eq.s32.totalorder %v3126_v40, %v3201_v58  ;;  %vm456_vm14 = vcmp.eq.s32.totalorder %v3211_v59, %v3132_v41  ;;  %v2664_v10 = vpack.c.bf16 %v308_v5, %v307_v2  ;;  %v294_v2 = vld [vmem:[%s3051_s29 + $0x68] sm:$0xff]  ;;  %v2008_v51 = vld [vmem:[%s4161_s4 + $0x20] sm:$0xff] }
  0x23   : > { %362 = vxpose.xlu0.b32.cont [5/16] (narrow) %v3094_v24, 32  ;;  %vm2740_vm7 = vmpackc.low %vm446_vm4, %vm443_vm3  ;;  %vm455_vm3 = vcmp.eq.s32.totalorder %v3211_v59, %v3135_v42  ;;  %vm458_vm4 = vcmp.eq.s32.totalorder %v3214_v60, %v3135_v42  ;;  %v2667_v35 = vpack.c.bf16 %v292_v17, %v291_v16  ;;  %745 = vperm.xlu1 %2972, %v344_v30   ;;  %v346_v16 = vld [vmem:[%s4161_s4 + $0x10] sm:$0xff]  ;;  %v347_v30 = vld [vmem:[%s4161_s4 + $0x18] sm:$0xff] }
  0x24   : > { %vm2742_vm9 = vmpackc.low %vm453_vm6, %vm450_vm5  ;;  %vm462_vm6 = vcmp.eq.s32.totalorder %v3238_v6, %v3132_v41  ;;  %4201 = vst [vmem:[#allocation4_spill] sm:$0xff] %v3367_v38  ;;  %v2670_v46 = vpack.c.bf16 %v310_v20, %v309_v19  ;;  %v2673_v17 = vpack.c.bf16 %v294_v2, %v293_v63  ;;  %v3535_v63 = vld [vmem:[%s3046_s26 + $0x78] sm:$0xff]  ;;  %v2009_v5 = vld [vmem:[%s4161_s4 + $0x28] sm:$0xff] }
  0x25   : > { %2737 = vmatpush1.bf16.msk.msra.mxu0 %vm2736_vm15, %v4176_v53  ;;  %vm459_vm15 = vcmp.eq.s32.totalorder %v3214_v60, %v3132_v41  ;;  %4206 = vst [vmem:[#allocation5_spill] sm:$0xff] %v3410_v57  ;;  %4215 = vst [vmem:[#allocation6_spill] sm:$0xff] %v3489_v18  ;;  %v316_v11 = vld [vmem:[%s3051_s29 + $0x118] sm:$0xff] }
  0x26   : > { %2739 = vmatprep.subr.msk.bf16.mxu0 %vm3192_vm2, %v4176_v53  ;;  %vm2744_vm2 = vmpackc.low %vm452_vm10, %vm449_vm8  ;;  %vm433_vm8 = vcmp.eq.s32.totalorder %v3088_v23, %v3201_v58  ;;  %4223 = vst [vmem:[#allocation8_spill] sm:$0xff] %v3535_v63 }
  0x27   : > { %2651 = vmatpush3.bf16.xpose.msk.msra.mxu1 %vm3056_vm1, %v2649_v31  ;;  %363 = vxpose.xlu0.b32.cont [6/16] (narrow) %v3111_v32, 32  ;;  %vm3274_vm5 = vmpackc.low %vm459_vm15, %vm456_vm14  ;;  %vm461_vm14 = vcmp.eq.s32.totalorder %v3238_v6, %v3135_v42  ;;  %vm464_vm15 = vcmp.eq.s32.totalorder %v3241_v7, %v3135_v42  ;;  %v3348_v31 = vsub.s32 1, %v3088_v23 }
  0x28   : > { %2654 = vmatprep.subr.msk.bf16.mxu1 %vm3056_vm1, %v2652_v33  ;;  %v581_v33 = vsub.s32 3, %v3088_v23 }
  0x29   : > { %2741 = vmatpush1.bf16.msk.msra.mxu0 %vm2740_vm7, %v4176_v53  ;;  %vm465_vm7 = vcmp.eq.s32.totalorder %v3241_v7, %v3132_v41  ;;  %v578_v49 = vrot.slane %v3113_v34, %v3348_v31 }
  0x2a   : > { %2743 = vmatprep.subr.msk.bf16.mxu0 %vm2742_vm9, %v4176_v53  ;;  %vm3304_vm9 = vmpackc.low %vm458_vm4, %vm455_vm3  ;;  %vm468_vm3 = vcmp.eq.s32.totalorder %v3289_v13, %v3132_v41  ;;  %v582_v47 = vrot.slane %v3113_v34, %v581_v33 }
  0x2b   : > { %364 = vxpose.xlu0.b32.cont [7/16] (narrow) %v3144_v45, 32  ;;  %vm3319_vm10 = vmpackc.low %vm465_vm7, %vm462_vm6  ;;  %vm474_vm7 = vcmp.eq.s32.totalorder %v3324_v25, %v3132_v41 }
  0x2c   : > { %vm3362_vm4 = vmpackc.low %vm442_vm13, %vm439_vm12  ;;  %vm467_vm13 = vcmp.eq.s32.totalorder %v3289_v13, %v3135_v42  ;;  %v3417_v62 = vrot.slane %v582_v47, %v3348_v31  ;;  %v296_v47 = vld [vmem:[%s3051_s29 + $0x78] sm:$0xff] }
  0x2d   : > { %2745 = vmatpush1.bf16.msk.msra.mxu0 %vm2744_vm2, %v4176_v53  ;;  %vm3340_vm2 = vmpackc.low %vm436_vm11, %vm433_vm8  ;;  %vm471_vm11 = vcmp.eq.s32.totalorder %v3292_v15, %v3132_v41  ;;  %vm477_vm8 = vcmp.eq.s32.totalorder %v3327_v26, %v3132_v41  ;;  %v2010_v41 = vld [vmem:[%s4161_s4 + $0x30] sm:$0xff] }
  0x2e   : > { %2747 = vmatprep.subr.msk.bf16.mxu0 %vm3274_vm5, %v4176_v53  ;;  %vm3384_vm12 = vmpackc.low %vm464_vm15, %vm461_vm14  ;;  %vm470_vm5 = vcmp.eq.s32.totalorder %v3292_v15, %v3135_v42 }
  0x2f   : > { %2657 = vmatpush3.bf16.xpose.msk.msra.mxu1 %vm3056_vm1, %v2655_v52  ;;  %365 = vxpose.xlu0.b32.cont [8/16] (narrow) %v3182_v55, 32  ;;  %vm3392_vm6 = vmpackc.low %vm471_vm11, %vm468_vm3  ;;  %v345_v52 = vld [vmem:[%s4161_s4 + $0x8] sm:$0xff] }
  0x30   : > { %2660 = vmatprep.subr.msk.bf16.mxu1 %vm3056_vm1, %v2658_v56  ;;  %v3404_v56 = vrot.slane %v578_v49, %v3348_v31  ;;  %vm3432_vm14 = vmpackc.low %vm470_vm5, %vm467_vm13  ;;  %750 = vperm.xlu1 %2972, %v345_v52   ;;  %vm609_vm13 = vcmp.eq.s32.totalorder %v3126_v40, %v3417_v62  ;;  %v313_v49 = vld [vmem:[%s3051_s29 + $0x100] sm:$0xff] }
  0x31   : > { %2749 = vmatpush1.bf16.msk.msra.mxu0 %vm3304_vm9, %v4176_v53  ;;  %vm473_vm9 = vcmp.eq.s32.totalorder %v3324_v25, %v3135_v42  ;;  %vm3449_vm3 = vmpackc.low %vm477_vm8, %vm474_vm7  ;;  %vm600_vm8 = vcmp.eq.s32.totalorder %v3088_v23, %v3417_v62  ;;  %v2682_v2 = vpack.c.bf16 %v314_v50, %v313_v49  ;;  %v2012_v49 = vld [vmem:[%s4161_s4 + $0x40] sm:$0xff] }
  0x32   : > { %2751 = vmatprep.subr.msk.bf16.mxu0 %vm3319_vm10, %v4176_v53  ;;  %vm476_vm10 = vcmp.eq.s32.totalorder %v3327_v26, %v3135_v42  ;;  %vm599_vm15 = vcmp.eq.s32.totalorder %v3088_v23, %v3404_v56  ;;  %vm602_vm11 = vcmp.eq.s32.totalorder %v3117_v36, %v3404_v56  ;;  %vm608_vm7 = vcmp.eq.s32.totalorder %v3126_v40, %v3404_v56 }
  0x33   : > { %366 = vxpose.xlu0.b32.cont [9/16] (narrow) %v3217_v61, 32  ;;  %vm3465_vm5 = vmpackc.low %vm476_vm10, %vm473_vm9  ;;  %vm603_vm9 = vcmp.eq.s32.totalorder %v3117_v36, %v3417_v62 }
  0x34   : > { %vm3484_vm10 = vmpackc.low %vm602_vm11, %vm599_vm15  ;;  %755 = vperm.xlu1 %2972, %v346_v16  }
  0x35   : > { %2753 = vmatpush1.bf16.msk.msra.mxu0 %vm3384_vm12, %v4176_v53  ;;  %vm606_vm12 = vcmp.eq.s32.totalorder %v3123_v39, %v3417_v62  ;;  %vm3508_vm11 = vmpackc.low %vm603_vm9, %vm600_vm8 }
  0x36   : > { %2755 = vmatprep.subr.msk.bf16.mxu0 %vm3392_vm6, %v4176_v53  ;;  %vm605_vm6 = vcmp.eq.s32.totalorder %v3123_v39, %v3404_v56  ;;  %vm3494_vm0 = vmpackc.low %vm609_vm13, %vm606_vm12 }
  0x37   : > { %2663 = vmatpush3.bf16.xpose.msk.msra.mxu1 %vm3056_vm1, %v2661_v8  ;;  %367 = vxpose.xlu0.b32.cont [10/16] (narrow) %v3263_v9, 32  ;;  %v311_v8 = vld [vmem:[%s3051_s29 + $0xf0] sm:$0xff]  ;;  %vm3501_vm15 = vmpackc.low %vm608_vm7, %vm605_vm6  ;;  %v4280_v9 = vmov 1.0|1.0  }
  0x38   : > { %2666 = vmatprep.subr.msk.bf16.mxu1 %vm3056_vm1, %v2664_v10  ;;  %v312_v10 = vld [vmem:[%s3051_s29 + $0xf8] sm:$0xff]  ;;  %v4219_v22 = vsel %vm3501_vm15, 4294967295, %v4218_v22  ;;  %760 = vperm.xlu1 %2972, %v347_v30  }
  0x39   : > { %v2676_v19 = vpack.c.bf16 %v312_v10, %v311_v8  ;;  %2757 = vmatpush1.bf16.msk.msra.mxu0 %vm3432_vm14, %v4176_v53  ;;  %v585_v8 = vsub.s32 5, %v3088_v23  ;;  %v315_v10 = vld [vmem:[%s3051_s29 + $0x110] sm:$0xff]  ;;  %vm4224_vm14 = vcmask 261120  }
  0x3a   : > { %2759 = vmatprep.subr.msk.bf16.mxu0 %vm3449_vm3, %v4176_v53  ;;  %vm4225_vm3 = vmmov %vm4224_vm14 }
  0x3b   : > { %368 = vxpose.xlu0.b32.cont [11/16] (narrow) %v3286_v12, 32  ;;  %v586_v16 = vrot.slane %v3113_v34, %v585_v8  ;;  %v3574_v34 = vld [vmem:[%s4160_s3 + $0x10] sm:$0xff]  ;;  %vm4229_vm7 = vmmov %vm4225_vm3 }
  0x3c   : > { %1606 = vperm.xlu1 %2972, %v2008_v51   ;;  %vm4230_vm8 = vmmov %vm4225_vm3  ;;  %v2013_v51 = vld [vmem:[%s4161_s4 + $0x48] sm:$0xff] }
  0x3d   : > { %2761 = vmatpush1.bf16.msk.msra.mxu0 %vm3465_vm5, %v4176_v53  ;;  %v3558_v30 = vrot.slane %v586_v16, %v3348_v31  ;;  %v317_v31 = vld [vmem:[%s3051_s29 + $0x120] sm:$0xff]  ;;  %vm4226_vm5 = vmmov %vm4225_vm3  ;;  %v323_v16 = vld [vmem:[%s3051_s29 + $0x150] sm:$0xff] }
  0x3e   : > { %2795 = vmatprep.subr.msk.bf16.mxu0 %vm3508_vm11, %v4176_v53  ;;  %vm4231_vm9 = vmmov %vm4225_vm3 }
  0x3f   : > { %2669 = vmatpush3.bf16.xpose.msk.msra.mxu1 %vm3056_vm1, %v2667_v35  ;;  %369 = vxpose.xlu0.b32.cont [12/16] (narrow) %v3367_v38, 32  ;;  %v3516_v35 = vld [vmem:[%s3046_s26 + $0x70] sm:$0xff]  ;;  %vm607_vm12 = vcmp.eq.s32.totalorder %v3123_v39, %v3558_v30  ;;  %vm610_vm13 = vcmp.eq.s32.totalorder %v3126_v40, %v3558_v30  ;;  %v333_v40 = vld [vmem:[%s4160_s3 + $0x18] sm:$0xff] }
  0x40   : > { %2672 = vmatprep.subr.msk.bf16.mxu1 %vm3056_vm1, %v2670_v46  ;;  %4222 = vst [vmem:[#allocation7_spill] sm:$0xff] %v3516_v35  ;;  %v295_v46 = vld [vmem:[%s3051_s29 + $0x70] sm:$0xff]  ;;  %1611 = vperm.xlu1 %2972, %v2009_v5   ;;  %vm3587_vm6 = vmpackc.low %vm610_vm13, %vm607_vm12  ;;  %vm448_vm13 = vcmp.eq.s32.totalorder %v3141_v44, %v3201_v58 }
  0x41   : > { %v2679_v52 = vpack.c.bf16 %v296_v47, %v295_v46  ;;  %v2011_v46 = vld [vmem:[%s4161_s4 + $0x38] sm:$0xff]  ;;  %v318_v47 = vld [vmem:[%s3051_s29 + $0x128] sm:$0xff]  ;;  %v2014_v5 = vld [vmem:[%s4161_s4 + $0x50] sm:$0xff] }
  0x42   : > { %v2694_v39 = vpack.c.bf16 %v318_v47, %v317_v31  ;;  %v325_v31 = vld [vmem:[%s3051_s29 + $0x160] sm:$0xff]  ;;  %v326_v47 = vld [vmem:[%s3051_s29 + $0x168] sm:$0xff]  ;;  %vm4233_vm12 = vmmov %vm4225_vm3 }
  0x43   : > { %370 = vxpose.xlu0.b32.cont [13/16] (narrow) %v3410_v57, 32 }
  0x44   : > { %1616 = vperm.xlu1 %2972, %v2010_v41   ;;  %v322_v41 = vld [vmem:[%s3051_s29 + $0x148] sm:$0xff] }
  0x47   : > { %2675 = vmatpush3.bf16.xpose.msk.msra.mxu1 %vm3056_vm1, %v2673_v17  ;;  %371 = vxpose.xlu0.b32.cont [14/16] (narrow) %v3489_v18, 32  ;;  %v2688_v17 = vpack.c.bf16 %v316_v11, %v315_v10  ;;  %v2015_v10 = vld [vmem:[%s4161_s4 + $0x58] sm:$0xff]  ;;  %v321_v11 = vld [vmem:[%s3051_s29 + $0x140] sm:$0xff] }
  0x48   : > { %2678 = vmatprep.subr.msk.bf16.mxu1 %vm3056_vm1, %v2676_v19  ;;  %v3555_v19 = vld [vmem:[%s4160_s3 + $0x8] sm:$0xff]  ;;  %1621 = vperm.xlu1 %2972, %v2011_v46  }
  0x4b   : > { %372 = vxpose.xlu0.b32.cont [15/16] (narrow) %v3516_v35, 32 }
  0x4c   : > { %1727 = vperm.xlu1 %2972, %v2012_v49   ;;  %v2718_v49 = vpack.c.bf16 %v326_v47, %v325_v31 }
  0x4f   : > { %2681 = vmatpush3.bf16.xpose.msk.msra.mxu1 %vm3056_vm1, %v2679_v52  ;;  %373 = vxpose.xlu0.b32.end [16/16] (narrow) %v3535_v63, 32  ;;  %v319_v52 = vld [vmem:[%s3051_s29 + $0x130] sm:$0xff] }
  0x50   : > { %2684 = vmatprep.subr.msk.bf16.mxu1 %vm3056_vm1, %v2682_v2  ;;  %1732 = vperm.xlu1 %2972, %v2013_v51   ;;  %v328_v51 = vld [vmem:[%s3051_s29 + $0x178] sm:$0xff] }
  0x54   : > { %1737 = vperm.xlu1 %2972, %v2014_v5   ;;  %v4244_v5 = vmov 0 }
  0x56   : > { %2357 = vmatmul.mubr.msk.f32.vlgmr.msra.gmra.mrb[0].mxu1 %vm4224_vm14, %v3032_v0  ;;  %vm4232_vm14 = vmmov %vm4225_vm3 }
  0x57   : > { %2687 = vmatpush3.bf16.xpose.msk.msra.mxu1 %vm3056_vm1, %v2682_v2  ;;  %2358 = vmatprep.mubr.msk.f32.mxu1 %vm4225_vm3, %v3555_v19  ;;  %v320_v2 = vld [vmem:[%s3051_s29 + $0x138] sm:$0xff] }
  0x58   : > { %2690 = vmatprep.subr.msk.bf16.mxu1 %vm3056_vm1, %v2688_v17  ;;  %v2700_v8 = vpack.c.bf16 %v320_v2, %v319_v52  ;;  %1742 = vperm.xlu1 %2972, %v2015_v10   ;;  %v4242_v2 = vmov 0 }
  0x5a   : > { %2359 = vmatmul.mubr.msk.f32.gmra.mrb[2].mxu1 %vm4226_vm5, %v3555_v19  ;;  %vm4234_vm5 = vmmov %vm4225_vm3 }
  0x5b   : > { %2360 = vmatprep.mubr.msk.f32.mxu1 %vm4229_vm7, %v3574_v34  ;;  %vm612_vm7 = vcmp.eq.s32.totalorder %v3138_v43, %v3417_v62 }
  0x5e   : > { %2361 = vmatmul.mubr.msk.f32.gmra.mrb[4].mxu1 %vm4230_vm8, %v3574_v34  ;;  %vm615_vm8 = vcmp.eq.s32.totalorder %v3141_v44, %v3417_v62 }
  0x5f   : > { %2693 = vmatpush3.bf16.xpose.msk.msra.mxu1 %vm3056_vm1, %v2688_v17  ;;  %2362 = vmatprep.mubr.msk.f32.mxu1 %vm4231_vm9, %v333_v40  ;;  %v324_v17 = vld [vmem:[%s3051_s29 + $0x158] sm:$0xff]  ;;  %vm4237_vm9 = vmmov %vm4225_vm3 }
  0x60   : > { %2696 = vmatprep.subr.msk.bf16.mxu1 %vm3056_vm1, %v2694_v39  ;;  %v2712_v46 = vpack.c.bf16 %v324_v17, %v323_v16 }
  0x62   : > { %2363 = vmatmul.mubr.msk.f32.gmra.mrb[6].mxu1 %vm4232_vm14, %v333_v40  ;;  %vm451_vm14 = vcmp.eq.s32.totalorder %v3151_v48, %v3201_v58 }
  0x63   : > { %2489 = vmatprep.mubr.msk.f32.mxu1 %vm4225_vm3, %v3032_v0  ;;  %v2706_v0 = vpack.c.bf16 %v322_v41, %v321_v11  ;;  %vm454_vm3 = vcmp.eq.s32.totalorder %v3179_v54, %v3201_v58  ;;  %v4258_v41 = vmov 0  ;;  %v2989_v11 = vmov 0.0|0.0  }
  0x67   : > { %2699 = vmatpush3.bf16.xpose.msk.msra.mxu1 %vm3056_vm1, %v2694_v39  ;;  %v327_v39 = vld [vmem:[%s3051_s29 + $0x170] sm:$0xff] }
  0x68   : > { %2702 = vmatprep.subr.msk.bf16.mxu1 %vm3056_vm1, %v2700_v8  ;;  %v2724_v52 = vpack.c.bf16 %v328_v51, %v327_v39 }
  0x6f   : > { %2705 = vmatpush3.bf16.xpose.msk.msra.mxu1 %vm3056_vm1, %v2700_v8 }
  0x70   : > { %2708 = vmatprep.subr.msk.bf16.mxu1 %vm3056_vm1, %v2706_v0 }
  0x77   : > { %2711 = vmatpush3.bf16.xpose.msk.msra.mxu1 %vm3056_vm1, %v2706_v0  ;;  %v4260_v0 = vmov 0 }
  0x78   : > { %2714 = vmatprep.subr.msk.bf16.mxu1 %vm3056_vm1, %v2712_v46  ;;  %2973 = vset.pattern.permute.xlu0 %v2987_v27 }
  0x7f   : > { %2717 = vmatpush3.bf16.xpose.msk.msra.mxu1 %vm3056_vm1, %v2712_v46 }
  0x80   : > { %2720 = vmatprep.subr.msk.bf16.mxu1 %vm3056_vm1, %v2718_v49 }
  0x87   : > { %2723 = vmatpush3.bf16.xpose.msk.msra.mxu1 %vm3056_vm1, %v2718_v49 }
  0x88   : > { %2726 = vmatprep.subr.msk.bf16.mxu1 %vm3056_vm1, %v2724_v52 }
  0x8f   : > { %2729 = vmatpush3.bf16.xpose.msk.msra.mxu1 %vm3056_vm1, %v2724_v52  ;;  %vm445_vm1 = vcmp.eq.s32.totalorder %v3138_v43, %v3201_v58 }
  0x90   : > { %2763 = vmatprep.subr.msk.bf16.mxu1 %vm3340_vm2, %v4176_v53 }
  0x93   : > { %v3651_v27 = vpop.trf.xlu0 }
  0x94   : > { %1159 = vmatmul.mubr.f32.vlgmr.msra.gmra.mrb[0].mxu0 %v3651_v27 }
  0x95   : > { %1164 = vmatprep.mubr.f32.mxu0 %v4175_v1  ;;  %2797 = vmatpush1.bf16.xpose.msk.msra.mxu0 %vm3484_vm10, %v4176_v53 }
  0x96   : > { %2490 = vmatmul.mubr.msk.f32.vlgmr.msra.gmra.mrb[8].mxu1 %vm4233_vm12, %v3555_v19  ;;  %2799 = vmatprep.subr.msk.bf16.mxu0 %vm3494_vm0, %v4176_v53  ;;  %vm3698_vm12 = vmpackc.low %vm615_vm8, %vm612_vm7  ;;  %vm614_vm7 = vcmp.eq.s32.totalorder %v3141_v44, %v3404_v56  ;;  %vm618_vm8 = vcmp.eq.s32.totalorder %v3151_v48, %v3417_v62 }
  0x97   : > { %2765 = vmatpush3.bf16.msk.msra.mxu1 %vm3340_vm2, %v4176_v53  ;;  %v3670_v3 = vpop.trf.xlu0  ;;  %2492 = vmatprep.mubr.msk.f32.mxu1 %vm4234_vm5, %v3574_v34  ;;  %vm3683_vm2 = vmpackc.low %vm448_vm13, %vm445_vm1  ;;  %v4238_v34 = vmov 0  ;;  %vm460_vm13 = vcmp.eq.s32.totalorder %v3214_v60, %v3201_v58  ;;  %vm611_vm5 = vcmp.eq.s32.totalorder %v3138_v43, %v3404_v56 }
  0x98   : > { %1165 = vmatmul.mubr.f32.gmra.mrb[2].mxu0 %v3670_v3  ;;  %2767 = vmatprep.subr.msk.bf16.mxu1 %vm3362_vm4, %v4176_v53  ;;  %v4239_v34 = vsel %vm3698_vm12, 4294967295, %v4238_v34  ;;  %vm3707_vm1 = vmpackc.low %vm454_vm3, %vm451_vm14  ;;  %vm463_vm14 = vcmp.eq.s32.totalorder %v3238_v6, %v3201_v58  ;;  %vm466_vm3 = vcmp.eq.s32.totalorder %v3241_v7, %v3201_v58 }
  0x99   : > { %1170 = vmatprep.mubr.f32.mxu0 %v4175_v1 }
  0x9a   : > { %2493 = vmatmul.mubr.msk.f32.gmra.mrb[10].mxu1 %vm4237_vm9, %v333_v40 }
  0x9b   : > { %2769 = vmatpush3.bf16.msk.msra.mxu1 %vm3362_vm4, %v4176_v53  ;;  %2527 = vmatprep.mubr.f32.mxu1 %v3651_v27  ;;  %v3696_v19 = vpop.trf.xlu0  ;;  %vm457_vm4 = vcmp.eq.s32.totalorder %v3211_v59, %v3201_v58 }
  0x9c   : > { %1171 = vmatmul.mubr.f32.gmra.mrb[4].mxu0 %v3696_v19  ;;  %2771 = vmatprep.subr.msk.bf16.mxu1 %vm3683_vm2, %v4176_v53  ;;  %vm2778_vm9 = vmpackc.low %vm460_vm13, %vm457_vm4  ;;  %vm469_vm13 = vcmp.eq.s32.totalorder %v3289_v13, %v3201_v58 }
  0x9d   : > { %1176 = vmatprep.mubr.f32.mxu0 %v4175_v1  ;;  %2801 = vmatpush1.bf16.xpose.msk.msra.mxu0 %vm3501_vm15, %v4176_v53  ;;  %vm3754_vm4 = vmpackc.low %vm466_vm3, %vm463_vm14  ;;  %vm478_vm3 = vcmp.eq.s32.totalorder %v3327_v26, %v3201_v58 }
  0x9e   : > { %2803 = vmatprep.subr.msk.bf16.mxu0 %vm3698_vm12, %v4176_v53  ;;  %vm3742_vm12 = vmpackc.low %vm614_vm7, %vm611_vm5  ;;  %vm617_vm5 = vcmp.eq.s32.totalorder %v3151_v48, %v3404_v56  ;;  %vm620_vm7 = vcmp.eq.s32.totalorder %v3179_v54, %v3404_v56 }
  0x9f   : > { %2773 = vmatpush3.bf16.msk.msra.mxu1 %vm3683_vm2, %v4176_v53  ;;  %v3724_v37 = vpop.trf.xlu0  ;;  %vm621_vm2 = vcmp.eq.s32.totalorder %v3179_v54, %v3417_v62  ;;  %v4243_v2 = vsel %vm3742_vm12, 4294967295, %v4242_v2 }
  0xa0   : > { %1177 = vmatmul.mubr.f32.gmra.mrb[6].mxu0 %v3724_v37  ;;  %2775 = vmatprep.subr.msk.bf16.mxu1 %vm3707_vm1, %v4176_v53  ;;  %vm3749_vm15 = vmpackc.low %vm621_vm2, %vm618_vm8  ;;  %vm624_vm8 = vcmp.eq.s32.totalorder %v3211_v59, %v3417_v62  ;;  %vm627_vm2 = vcmp.eq.s32.totalorder %v3214_v60, %v3417_v62 }
  0xa1   : > { %v4245_v5 = vsel %vm3749_vm15, 4294967295, %v4244_v5 }
  0xa2   : > { %v746_v33 = vpop.permute.xlu1 %745 }
  0xa3   : > { %2777 = vmatpush3.bf16.msk.msra.mxu1 %vm3707_vm1, %v4176_v53  ;;  %vm472_vm1 = vcmp.eq.s32.totalorder %v3292_v15, %v3201_v58 }
  0xa4   : > { %2779 = vmatprep.subr.msk.bf16.mxu1 %vm2778_vm9, %v4176_v53  ;;  %vm2786_vm14 = vmpackc.low %vm472_vm1, %vm469_vm13  ;;  %vm601_vm1 = vcmp.eq.s32.totalorder %v3088_v23, %v3558_v30  ;;  %v4252_v23 = vmov 0 }
  0xa5   : > { %2805 = vmatpush1.bf16.xpose.msk.msra.mxu0 %vm3742_vm12, %v4176_v53  ;;  %vm3791_vm12 = vmpackc.low %vm627_vm2, %vm624_vm8  ;;  %vm630_vm8 = vcmp.eq.s32.totalorder %v3238_v6, %v3417_v62  ;;  %vm633_vm2 = vcmp.eq.s32.totalorder %v3241_v7, %v3417_v62 }
  0xa6   : > { %2807 = vmatprep.subr.msk.bf16.mxu0 %vm3749_vm15, %v4176_v53  ;;  %vm3784_vm15 = vmpackc.low %vm620_vm7, %vm617_vm5  ;;  %vm623_vm5 = vcmp.eq.s32.totalorder %v3211_v59, %v3404_v56  ;;  %vm626_vm7 = vcmp.eq.s32.totalorder %v3214_v60, %v3404_v56 }
  0xa7   : > { %2781 = vmatpush3.bf16.msk.msra.mxu1 %vm2778_vm9, %v4176_v53  ;;  %vm475_vm9 = vcmp.eq.s32.totalorder %v3324_v25, %v3201_v58  ;;  %v4256_v58 = vmov 0 }
  0xa8   : > { %2783 = vmatprep.subr.msk.bf16.mxu1 %vm3754_vm4, %v4176_v53  ;;  %vm2790_vm13 = vmpackc.low %vm478_vm3, %vm475_vm9 }
  0xa9   : > { %vm3820_vm3 = vmpackc.low %vm626_vm7, %vm623_vm5  ;;  %vm639_vm5 = vcmp.eq.s32.totalorder %v3292_v15, %v3417_v62 }
  0xab   : > { %2785 = vmatpush3.bf16.msk.msra.mxu1 %vm3754_vm4, %v4176_v53  ;;  %vm604_vm4 = vcmp.eq.s32.totalorder %v3117_v36, %v3558_v30  ;;  %v4289_v36 = vmov 0.0  }
  0xac   : > { %2787 = vmatprep.subr.msk.bf16.mxu1 %vm2786_vm14, %v4176_v53  ;;  %vm3816_vm9 = vmpackc.low %vm604_vm4, %vm601_vm1  ;;  %vm632_vm1 = vcmp.eq.s32.totalorder %v3241_v7, %v3404_v56  ;;  %vm636_vm4 = vcmp.eq.s32.totalorder %v3289_v13, %v3417_v62 }
  0xad   : > { %2809 = vmatpush1.bf16.xpose.msk.msra.mxu0 %vm3784_vm15, %v4176_v53  ;;  %v4253_v23 = vsel %vm3816_vm9, 4294967295, %v4252_v23 }
  0xae   : > { %2811 = vmatprep.subr.msk.bf16.mxu0 %vm3791_vm12, %v4176_v53 }
  0xaf   : > { %2789 = vmatpush3.bf16.msk.msra.mxu1 %vm2786_vm14, %v4176_v53  ;;  %vm3825_vm14 = vmpackc.low %vm633_vm2, %vm630_vm8  ;;  %vm635_vm2 = vcmp.eq.s32.totalorder %v3289_v13, %v3404_v56  ;;  %v751_v31 = vpop.permute.xlu1 %750 }
  0xb0   : > { %2791 = vmatprep.subr.msk.bf16.mxu1 %vm2790_vm13, %v4176_v53  ;;  %v4257_v58 = vsel %vm3825_vm14, 4294967295, %v4256_v58  ;;  %vm3853_vm8 = vmpackc.low %vm639_vm5, %vm636_vm4  ;;  %vm616_vm4 = vcmp.eq.s32.totalorder %v3141_v44, %v3558_v30  ;;  %vm642_vm5 = vcmp.eq.s32.totalorder %v3324_v25, %v3417_v62  ;;  %v4270_v44 = vmov 0 }
  0xb1   : > { %v4261_v0 = vsel %vm3853_vm8, 4294967295, %v4260_v0 }
  0xb3   : > { %2793 = vmatpush3.bf16.msk.msra.mxu1 %vm2790_vm13, %v4176_v53  ;;  %vm629_vm13 = vcmp.eq.s32.totalorder %v3238_v6, %v3404_v56  ;;  %v756_v40 = vpop.permute.xlu1 %755 }
  0xb4   : > { %2827 = vmatprep.subr.msk.bf16.mxu1 %vm3816_vm9, %v4176_v53  ;;  %vm3849_vm7 = vmpackc.low %vm632_vm1, %vm629_vm13  ;;  %vm638_vm13 = vcmp.eq.s32.totalorder %v3292_v15, %v3404_v56  ;;  %vm613_vm1 = vcmp.eq.s32.totalorder %v3138_v43, %v3558_v30  ;;  %v2000_v43 = vld [vmem:[%s4160_s3 + $0x20] sm:$0xff] }
  0xb5   : > { %2813 = vmatpush1.bf16.xpose.msk.msra.mxu0 %vm3820_vm3, %v4176_v53  ;;  %v4259_v41 = vsel %vm3849_vm7, 4294967295, %v4258_v41 }
  0xb6   : > { %2528 = vmatmul.mubr.f32.vlgmr.msra.gmra.mrb[8].mxu1 %v3670_v3  ;;  %2815 = vmatprep.subr.msk.bf16.mxu0 %vm3825_vm14, %v4176_v53 }
  0xb7   : > { %2530 = vmatprep.mubr.f32.mxu1 %v3696_v19 }
  0xba   : > { %2531 = vmatmul.mubr.f32.gmra.mrb[10].mxu1 %v3724_v37 }
  0xbc   : > { %2829 = vmatpush3.bf16.xpose.msk.msra.mxu1 %vm3816_vm9, %v4176_v53  ;;  %vm645_vm9 = vcmp.eq.s32.totalorder %v3327_v26, %v3417_v62 }
  0xbd   : > { %2817 = vmatpush1.bf16.xpose.msk.msra.mxu0 %vm3849_vm7, %v4176_v53  ;;  %2831 = vmatprep.subr.msk.bf16.mxu1 %vm3587_vm6, %v4176_v53  ;;  %vm3881_vm7 = vmpackc.low %vm638_vm13, %vm635_vm2  ;;  %vm644_vm2 = vcmp.eq.s32.totalorder %v3327_v26, %v3404_v56 }
  0xbe   : > { %2819 = vmatprep.subr.msk.bf16.mxu0 %vm3853_vm8, %v4176_v53  ;;  %vm3885_vm8 = vmpackc.low %vm616_vm4, %vm613_vm1  ;;  %vm619_vm1 = vcmp.eq.s32.totalorder %v3151_v48, %v3558_v30  ;;  %vm622_vm4 = vcmp.eq.s32.totalorder %v3179_v54, %v3558_v30  ;;  %v4272_v48 = vmov 0  ;;  %v4274_v54 = vmov 0 }
  0xbf   : > { %vm3889_vm14 = vmpackc.low %vm645_vm9, %vm642_vm5  ;;  %vm641_vm9 = vcmp.eq.s32.totalorder %v3324_v25, %v3404_v56 }
  0xc0   : > { %vm3909_vm13 = vmpackc.low %vm644_vm2, %vm641_vm9  ;;  %vm628_vm9 = vcmp.eq.s32.totalorder %v3214_v60, %v3558_v30 }
  0xc1   : > { %vm3926_vm5 = vmpackc.low %vm622_vm4, %vm619_vm1  ;;  %vm631_vm1 = vcmp.eq.s32.totalorder %v3238_v6, %v3558_v30  ;;  %vm634_vm4 = vcmp.eq.s32.totalorder %v3241_v7, %v3558_v30 }
  0xc2   : > { %v4271_v44 = vsel %vm3926_vm5, 4294967295, %v4270_v44 }
  0xc4   : > { %2833 = vmatpush3.bf16.xpose.msk.msra.mxu1 %vm3587_vm6, %v4176_v53 }
  0xc5   : > { %2821 = vmatpush1.bf16.xpose.msk.msra.mxu0 %vm3881_vm7, %v4176_v53  ;;  %2835 = vmatprep.subr.msk.bf16.mxu1 %vm3885_vm8, %v4176_v53 }
  0xc6   : > { %2823 = vmatprep.subr.msk.bf16.mxu0 %vm3889_vm14, %v4176_v53 }
  0xcc   : > { %2837 = vmatpush3.bf16.xpose.msk.msra.mxu1 %vm3885_vm8, %v4176_v53 }
  0xcd   : > { %2825 = vmatpush1.bf16.xpose.msk.msra.mxu0 %vm3909_vm13, %v4176_v53  ;;  %2839 = vmatprep.subr.msk.bf16.mxu1 %vm3926_vm5, %v4176_v53 }
  0xce   : > { %2859 = vmatprep.subr.msk.bf16.mxu0 %vm3508_vm11, %v4176_v53  ;;  %vm625_vm11 = vcmp.eq.s32.totalorder %v3211_v59, %v3558_v30 }
  0xcf   : > { %vm3940_vm2 = vmpackc.low %vm628_vm9, %vm625_vm11  ;;  %vm637_vm11 = vcmp.eq.s32.totalorder %v3289_v13, %v3558_v30  ;;  %vm640_vm9 = vcmp.eq.s32.totalorder %v3292_v15, %v3558_v30 }
  0xd0   : > { %v4273_v48 = vsel %vm3940_vm2, 4294967295, %v4272_v48 }
  0xd4   : > { %2841 = vmatpush3.bf16.xpose.msk.msra.mxu1 %vm3926_vm5, %v4176_v53  ;;  %vm3954_vm5 = vmpackc.low %vm634_vm4, %vm631_vm1  ;;  %vm643_vm1 = vcmp.eq.s32.totalorder %v3324_v25, %v3558_v30  ;;  %vm646_vm4 = vcmp.eq.s32.totalorder %v3327_v26, %v3558_v30 }
  0xd5   : > { %2843 = vmatprep.subr.msk.bf16.mxu1 %vm3940_vm2, %v4176_v53  ;;  %v4275_v54 = vsel %vm3954_vm5, 4294967295, %v4274_v54 }
  0xdc   : > { %2845 = vmatpush3.bf16.xpose.msk.msra.mxu1 %vm3940_vm2, %v4176_v53  ;;  %vm3968_vm2 = vmpackc.low %vm640_vm9, %vm637_vm11  ;;  %vm4283_vm11 = vnez %v4243_v2  ;;  %vm4284_vm9 = vnez %v4245_v5 }
  0xdd   : > { %2847 = vmatprep.subr.msk.bf16.mxu1 %vm3954_vm5, %v4176_v53 }
  0xe4   : > { %2849 = vmatpush3.bf16.xpose.msk.msra.mxu1 %vm3954_vm5, %v4176_v53  ;;  %vm3982_vm5 = vmpackc.low %vm646_vm4, %vm643_vm1  ;;  %vm4287_vm1 = vnez %v4261_v0  ;;  %vm2990_vm4 = vmmov 0  }
  0xe5   : > { %2851 = vmatprep.subr.msk.bf16.mxu1 %vm3968_vm2, %v4176_v53 }
  0xec   : > { %2853 = vmatpush3.bf16.xpose.msk.msra.mxu1 %vm3968_vm2, %v4176_v53 }
  0xed   : > { %2855 = vmatprep.subr.msk.bf16.mxu1 %vm3982_vm5, %v4176_v53 }
  0xf4   : > { %2857 = vmatpush3.bf16.xpose.msk.msra.mxu1 %vm3982_vm5, %v4176_v53 }
 0x129   : > { %v986_v6 = vpop.f32.mrb[0].mxu1 }
 0x12a   : > { %v988_v7 = vpop.f32.mrb[1].mxu1  ;;  %v987_v30 = vadd.f32 %v986_v6, %v746_v33 }
 0x12b   : > { %v989_v47 = vadd.f32 %v988_v7, %v746_v33 }
 0x12d   : > { %v992_v13 = vpop.f32.mrb[2].mxu1 }
 0x12e   : > { %v994_v15 = vpop.f32.mrb[3].mxu1  ;;  %v993_v28 = vadd.f32 %v992_v13, %v751_v31 }
 0x12f   : > { %v995_v8 = vadd.f32 %v994_v15, %v751_v31 }
 0x131   : > { %v998_v25 = vpop.f32.mrb[4].mxu1 }
 0x132   : > { %v1000_v56 = vpop.f32.mrb[5].mxu1  ;;  %v999_v38 = vadd.f32 %v998_v25, %v756_v40 }
 0x133   : > { %v1001_v12 = vadd.f32 %v1000_v56, %v756_v40 }
 0x135   : > { %v1004_v62 = vpop.f32.mrb[6].mxu1 }
 0x136   : > { %v1006_v26 = vpop.f32.mrb[7].mxu1 }
 0x167   : > { %v1160_v49 = vpop.f32.mrb[0].mxu0 }
 0x168   : > { %v1161_v39 = vadd.f32 %v1160_v49, %v987_v30  ;;  %v1162_v51 = vpop.f32.mrb[1].mxu0 }
 0x169   : > { %v1163_v52 = vadd.f32 %v1162_v51, %v989_v47 }
 0x16a   : > { %v1268_v63 = vmax.f32 %v1161_v39, 0.0 }
 0x16b   : > { %v1269_v1 = vmax.f32 %v1163_v52, 0.0  ;;  %v1166_v53 = vpop.f32.mrb[2].mxu0 }
 0x16c   : > { %v1167_v35 = vadd.f32 %v1166_v53, %v993_v28  ;;  %v1168_v18 = vpop.f32.mrb[3].mxu0  ;;  %v761_v53 = vpop.permute.xlu1 %760 }
 0x16d   : > { %v1169_v57 = vadd.f32 %v1168_v18, %v995_v8  ;;  %1344 = vmatprep.mubr.f32.mxu0 %v1269_v1  ;;  %v1005_v1 = vadd.f32 %v1004_v62, %v761_v53  ;;  %v1007_v18 = vadd.f32 %v1006_v26, %v761_v53 }
 0x16e   : > { %1345 = vmatmul.mubr.f32.vlgmr.msra.gmra.mrb[8].mxu0 %v1268_v63  ;;  %v1271_v30 = vmax.f32 %v1167_v35, 0.0 }
 0x16f   : > { %v1272_v6 = vmax.f32 %v1169_v57, 0.0  ;;  %2861 = vmatpush1.bf16.xpose.msk.msra.mxu0 %vm3484_vm10, %v4280_v9  ;;  %v1172_v7 = vpop.f32.mrb[4].mxu0  ;;  %vm4281_vm10 = vnez %v4219_v22 }
 0x170   : > { %v1173_v13 = vadd.f32 %v1172_v7, %v999_v38  ;;  %v1174_v47 = vpop.f32.mrb[5].mxu0  ;;  %2863 = vmatprep.subr.msk.bf16.mxu0 %vm3494_vm0, %v4280_v9  ;;  %vm4282_vm0 = vnez %v4239_v34 }
 0x171   : > { %v1175_v15 = vadd.f32 %v1174_v47, %v1001_v12  ;;  %1349 = vmatprep.mubr.f32.mxu0 %v1272_v6  ;;  %v2988_v12 = vmov 1.0  }
 0x172   : > { %1350 = vmatmul.mubr.f32.gmra.mrb[10].mxu0 %v1271_v30  ;;  %v1274_v25 = vmax.f32 %v1173_v13, 0.0 }
 0x173   : > { %v1275_v63 = vmax.f32 %v1175_v15, 0.0  ;;  %v1178_v57 = vpop.f32.mrb[6].mxu0 }
 0x174   : > { %v1179_v56 = vadd.f32 %v1178_v57, %v1005_v1  ;;  %v1180_v42 = vpop.f32.mrb[7].mxu0 }
 0x175   : > { %v1181_v49 = vadd.f32 %v1180_v42, %v1007_v18  ;;  %1354 = vmatprep.mubr.f32.mxu0 %v1275_v63 }
 0x176   : > { %1355 = vmatmul.mubr.f32.gmra.mrb[12].mxu0 %v1274_v25  ;;  %v1277_v20 = vmax.f32 %v1179_v56, 0.0 }
 0x177   : > { %v1278_v38 = vmax.f32 %v1181_v49, 0.0  ;;  %2865 = vmatpush1.bf16.xpose.msk.msra.mxu0 %vm4281_vm10, %v4280_v9 }
 0x178   : > { %2867 = vmatprep.subr.msk.bf16.mxu0 %vm4282_vm0, %v4280_v9 }
 0x179   : > { %1359 = vmatprep.mubr.f32.mxu0 %v1278_v38 }
 0x17a   : > { %1360 = vmatmul.mubr.f32.gmra.mrb[14].mxu0 %v1277_v20 }
 0x17b   : > { %1514 = vmatprep.mubr.f32.mxu0 %v2988_v12 }
 0x17f   : > { %2869 = vmatpush1.bf16.xpose.msk.msra.mxu0 %vm4283_vm11, %v4280_v9 }
 0x180   : > { %2871 = vmatprep.subr.msk.bf16.mxu0 %vm4284_vm9, %v4280_v9 }
 0x187   : > { %2873 = vmatpush1.bf16.xpose.msk.msra.mxu0 %vm3784_vm15, %v4280_v9  ;;  %vm4285_vm15 = vnez %v4257_v58 }
 0x188   : > { %2875 = vmatprep.subr.msk.bf16.mxu0 %vm3791_vm12, %v4280_v9  ;;  %vm4286_vm12 = vnez %v4259_v41 }
 0x189   : > { %v2529_v22 = vpop.f32.mrb[8].mxu1 }
 0x18a   : > { %v2946_v35 = vadd.f32 %v2529_v22, %v751_v31  ;;  %v1249_v34 = vpop.f32.mrb[9].mxu1 }
 0x18b   : > { %v2947_v62 = vadd.f32 %v1249_v34, %v746_v33 }
 0x18c   : > { %v1273_v2 = vmax.f32 %v2946_v35, 0.0 }
 0x18d   : > { %v1270_v26 = vmax.f32 %v2947_v62, 0.0  ;;  %v2532_v39 = vpop.f32.mrb[10].mxu1 }
 0x18e   : > { %v2948_v51 = vadd.f32 %v2532_v39, %v761_v53  ;;  %v1259_v52 = vpop.f32.mrb[11].mxu1 }
 0x18f   : > { %v2949_v28 = vadd.f32 %v1259_v52, %v756_v40  ;;  %2877 = vmatpush1.bf16.xpose.msk.msra.mxu0 %vm3820_vm3, %v4280_v9  ;;  %2565 = vmatprep.mubr.f32.mxu1 %v1270_v26  ;;  %vm4288_vm3 = vnez %v4253_v23 }
 0x190   : > { %2566 = vmatmul.mubr.f32.vlgmr.msra.gmra.mrb[12].mxu1 %v1273_v2  ;;  %2879 = vmatprep.subr.msk.bf16.mxu0 %vm4285_vm15, %v4280_v9  ;;  %v1279_v10 = vmax.f32 %v2948_v51, 0.0 }
 0x191   : > { %v1276_v5 = vmax.f32 %v2949_v28, 0.0 }
 0x193   : > { %2568 = vmatprep.mubr.f32.mxu1 %v1276_v5 }
 0x194   : > { %2569 = vmatmul.mubr.f32.gmra.mrb[14].mxu1 %v1279_v10 }
 0x197   : > { %2881 = vmatpush1.bf16.xpose.msk.msra.mxu0 %vm4286_vm12, %v4280_v9 }
 0x198   : > { %2883 = vmatprep.subr.msk.bf16.mxu0 %vm4287_vm1, %v4280_v9 }
 0x19f   : > { %2885 = vmatpush1.bf16.xpose.msk.msra.mxu0 %vm3881_vm7, %v4280_v9  ;;  %vm4291_vm7 = vnez %v4273_v48 }
 0x1a0   : > { %2887 = vmatprep.subr.msk.bf16.mxu0 %vm3889_vm14, %v4280_v9  ;;  %vm4290_vm14 = vnez %v4271_v44 }
 0x1a7   : > { %2889 = vmatpush1.bf16.xpose.msk.msra.mxu0 %vm3909_vm13, %v4280_v9  ;;  %vm4292_vm13 = vnez %v4275_v54 }
 0x1a8   : > { %2890 = vmatprep.subr.bf16.mxu0 %v2989_v11 }
 0x1ae   : > { %1515 = vmatmul.mubr.f32.vlgmr.msra.gmra.mrb[16].mxu0 %v2988_v12 }
 0x1af   : > { %2892 = vmatpush3.bf16.xpose.msk.msra.mxu0 %vm4288_vm3, %v4280_v9  ;;  %2603 = vmatprep.mubr.msk.f32.mxu0 %vm2990_vm4, %v4289_v36  ;;  %v2006_v36 = vld [vmem:[%s4160_s3 + $0x50] sm:$0xff] }
 0x1b0   : > { %2893 = vmatprep.subr.bf16.mxu0 %v2989_v11 }
 0x1b7   : > { %2895 = vmatpush3.bf16.xpose.msk.msra.mxu0 %vm3587_vm6, %v4280_v9  ;;  %vm4293_vm6 = vcmask 261120  }
 0x1b8   : > { %2896 = vmatprep.subr.bf16.mxu0 %v2989_v11 }
 0x1bf   : > { %2898 = vmatpush3.bf16.xpose.msk.msra.mxu0 %vm3885_vm8, %v4280_v9  ;;  %vm4294_vm8 = vmmov %vm4293_vm6 }
 0x1c0   : > { %2899 = vmatprep.subr.bf16.mxu0 %v2989_v11 }
 0x1c7   : > { %2901 = vmatpush3.bf16.xpose.msk.msra.mxu0 %vm4290_vm14, %v4280_v9 }
 0x1c8   : > { %2902 = vmatprep.subr.bf16.mxu0 %v2989_v11 }
 0x1cf   : > { %2904 = vmatpush3.bf16.xpose.msk.msra.mxu0 %vm4291_vm7, %v4280_v9 }
 0x1d0   : > { %2905 = vmatprep.subr.bf16.mxu0 %v2989_v11 }
 0x1d7   : > { %2907 = vmatpush3.bf16.xpose.msk.msra.mxu0 %vm4292_vm13, %v4280_v9 }
 0x1d8   : > { %2908 = vmatprep.subr.bf16.mxu0 %v2989_v11 }
 0x1df   : > { %2910 = vmatpush3.bf16.xpose.msk.msra.mxu0 %vm3968_vm2, %v4280_v9 }
 0x1e0   : > { %2911 = vmatprep.subr.bf16.mxu0 %v2989_v11  ;;  %v2005_v11 = vld [vmem:[%s4160_s3 + $0x48] sm:$0xff] }
 0x1e7   : > { %2913 = vmatpush3.bf16.xpose.msk.msra.mxu0 %vm3982_vm5, %v4280_v9  ;;  %vm4295_vm5 = vmmov %vm4293_vm6 }
 0x1e8   : > { %vm4296_vm2 = vmmov %vm4295_vm5 }
 0x1e9   : > { %vm4297_vm10 = vmmov %vm4296_vm2 }
 0x1ea   : > { %vm4298_vm0 = vmmov %vm4296_vm2 }
 0x1eb   : > { %vm4299_vm11 = vmmov %vm4298_vm0 }
 0x1ec   : > { %vm4300_vm9 = vmmov %vm4298_vm0 }
 0x1ed   : > { %vm4301_vm15 = vmmov %vm4298_vm0 }
 0x1ee   : > { %2604 = vmatmul.mubr.f32.vlgmr.msra.gmra.mrb[16].mxu0 %v2988_v12  ;;  %vm4302_vm12 = vmmov %vm4298_vm0 }
 0x1ef   : > { %2614 = vmatprep.mubr.msk.f32.mxu0 %vm4293_vm6, %v2000_v43  ;;  %vm4303_vm1 = vmmov %vm4298_vm0 }
 0x1f0   : > { %vm4304_vm3 = vmmov %vm4298_vm0 }
 0x1f1   : > { %vm4305_vm4 = vmmov %vm4298_vm0 }
 0x1f2   : > { %vm4306_vm14 = vmmov %vm4298_vm0 }
 0x1f3   : > { %vm4307_vm7 = vmmov %vm4298_vm0 }
 0x1f4   : > { %vm4308_vm13 = vmmov %vm4298_vm0 }
 0x1f5   : > { %vm4309_vm6 = vmmov %vm4298_vm0 }
 0x241   : > { %v1346_v50 = vpop.f32.mrb[8].mxu0 }
 0x242   : > { %v1348_v23 = vpop.f32.mrb[9].mxu0 }
 0x245   : > { %v1351_v58 = vpop.f32.mrb[10].mxu0 }
 0x246   : > { %v1353_v41 = vpop.f32.mrb[11].mxu0 }
 0x249   : > { %v1356_v0 = vpop.f32.mrb[12].mxu0 }
 0x24a   : > { %v1358_v16 = vpop.f32.mrb[13].mxu0 }
 0x24d   : > { %v1361_v17 = vpop.f32.mrb[14].mxu0 }
 0x24e   : > { %v1363_v46 = vpop.f32.mrb[15].mxu0 }
 0x263   : > { %v2567_v44 = vpop.f32.mrb[12].mxu1 }
 0x264   : > { %v1437_v48 = vadd.f32 %v2567_v44, %v1351_v58  ;;  %v1431_v54 = vpop.f32.mrb[13].mxu1 }
 0x265   : > { %v1432_v59 = vadd.f32 %v1431_v54, %v1346_v50  ;;  %v2007_v50 = vld [vmem:[%s4160_s3 + $0x58] sm:$0xff] }
 0x267   : > { %v2570_v9 = vpop.f32.mrb[14].mxu1 }
 0x268   : > { %v1447_v60 = vadd.f32 %v2570_v9, %v1361_v17  ;;  %v1441_v33 = vpop.f32.mrb[15].mxu1 }
 0x269   : > { %v1442_v31 = vadd.f32 %v1441_v33, %v1356_v0 }
 0x2c1   : > { %v1586_v40 = vpop.f32.mrb[16].mxu0 }
 0x2c2   : > { %v1590_v8 = vmax.f32 %v1586_v40, 1.0  ;;  %v2605_v6 = vpop.f32.mrb[17].mxu0 }
 0x2c4   : > { %2974 = vrcp.f32 %v1590_v8  ;;  %v2976_v8 = vld [vmem:[%s3046_s26] sm:$0xff] }
 0x2ce   : > { %v2975_v7 = vpop.eup %2974 }
 0x2cf   : > { %v1595_v30 = vrot.slane %v2975_v7, %v3106_v29  ;;  %v2001_v29 = vld [vmem:[%s4160_s3 + $0x28] sm:$0xff] }
 0x2d1   : > { %v1596_v13 = vmul.f32 %v1595_v30, %v1432_v59  ;;  %v1597_v47 = vmul.f32 %v1595_v30, %v1437_v48  ;;  %v1598_v53 = vmul.f32 %v1595_v30, %v1442_v31  ;;  %v1599_v15 = vmul.f32 %v1595_v30, %v1447_v60 }
 0x2d3   : > { %v1600_v1 = vadd.f32 %v1596_v13, %v3651_v27  ;;  %v1601_v18 = vadd.f32 %v1597_v47, %v3670_v3  ;;  %v1602_v63 = vadd.f32 %v1598_v53, %v3696_v19  ;;  %v1603_v57 = vadd.f32 %v1599_v15, %v3724_v37  ;;  %v2002_v27 = vld [vmem:[%s4160_s3 + $0x30] sm:$0xff]  ;;  %v2003_v3 = vld [vmem:[%s4160_s3 + $0x38] sm:$0xff]  ;;  %v2004_v19 = vld [vmem:[%s4160_s3 + $0x40] sm:$0xff]  ;;  %v1607_v37 = vpop.permute.xlu1 %1606 }
 0x2d4   : > { %2628 = vmatprep.mubr.msk.f32.mxu1 %vm4297_vm10, %v2004_v19  ;;  %vm4317_vm10 = vmmov %vm4298_vm0 }
 0x2d5   : > { %v2914_v25 = vpack.c.bf16 %v1601_v18, %v1600_v1  ;;  %v2918_v56 = vpack.c.bf16 %v1603_v57, %v1602_v63 }
 0x2d7   : > { %2915 = vmatprep.subr.bf16.mxu0 %v2914_v25  ;;  %v1612_v42 = vpop.permute.xlu1 %1611 }
 0x2d8   : > { %2917 = vmatpush3.bf16.msra.mxu0 %v2914_v25 }
 0x2d9   : > { %2919 = vmatprep.subr.bf16.mxu0 %v2918_v56 }
 0x2db   : > { %v1617_v49 = vpop.permute.xlu1 %1616 }
 0x2dc   : > { %2921 = vmatpush3.bf16.msra.mxu0 %v2918_v56 }
 0x2df   : > { %2615 = vmatmul.mubr.msk.f32.vlgmr.msra.gmra.mrb[18].mxu0 %vm4294_vm8, %v2001_v29  ;;  %v1622_v34 = vpop.permute.xlu1 %1621  ;;  %v4310_v29 = vld [vmem:[#allocation2_spill] sm:$0xff]  ;;  %vm4311_vm8 = vmmov %vm4298_vm0 }
 0x2e0   : > { %2617 = vmatprep.mubr.msk.f32.mxu0 %vm4295_vm5, %v2002_v27  ;;  %vm4313_vm5 = vmmov %vm4298_vm0 }
 0x2e3   : > { %2618 = vmatmul.mubr.msk.f32.gmra.mrb[20].mxu0 %vm4296_vm2, %v2003_v3  ;;  %v1728_v23 = vpop.permute.xlu1 %1727  ;;  %v4312_v3 = vld [vmem:[#allocation3_spill] sm:$0xff]  ;;  %vm4315_vm2 = vmmov %vm4298_vm0 }
 0x2e7   : > { %v1733_v58 = vpop.permute.xlu1 %1732 }
 0x2eb   : > { %v1738_v44 = vpop.permute.xlu1 %1737 }
 0x2ef   : > { %v1743_v9 = vpop.permute.xlu1 %1742 }
 0x3b2   : > { %v2616_v38 = vpop.f32.mrb[18].mxu0 }
 0x3b3   : > { %v1708_v20 = vadd.f32 %v2616_v38, %v1612_v42  ;;  %v1702_v12 = vpop.f32.mrb[19].mxu0 }
 0x3b4   : > { %v1703_v22 = vadd.f32 %v1702_v12, %v1607_v37  ;;  %v4314_v37 = vld [vmem:[#allocation4_spill] sm:$0xff]  ;;  %v4318_v12 = vld [vmem:[#allocation6_spill] sm:$0xff] }
 0x3b5   : > { %v1722_v35 = vmax.f32 %v1708_v20, 0.0 }
 0x3b6   : > { %v1721_v62 = vmax.f32 %v1703_v22, 0.0  ;;  %v2619_v26 = vpop.f32.mrb[20].mxu0 }
 0x3b7   : > { %v1718_v39 = vadd.f32 %v2619_v26, %v1622_v34  ;;  %v1712_v2 = vpop.f32.mrb[21].mxu0  ;;  %v4319_v34 = vld [vmem:[#allocation7_spill] sm:$0xff] }
 0x3b8   : > { %v2922_v51 = vpack.c.bf16 %v1722_v35, %v1721_v62  ;;  %v1713_v52 = vadd.f32 %v1712_v2, %v1617_v49  ;;  %v4316_v49 = vld [vmem:[#allocation5_spill] sm:$0xff] }
 0x3b9   : > { %v1724_v28 = vmax.f32 %v1718_v39, 0.0  ;;  %v4321_v39 = vld [vmem:[#allocation8_spill] sm:$0xff] }
 0x3ba   : > { %v1723_v5 = vmax.f32 %v1713_v52, 0.0  ;;  %2923 = vmatprep.subr.bf16.mxu1 %v2922_v51 }
 0x3bb   : > { %2925 = vmatpush3.bf16.msra.mxu1 %v2922_v51 }
 0x3bc   : > { %v2926_v10 = vpack.c.bf16 %v1724_v28, %v1723_v5 }
 0x3be   : > { %2927 = vmatprep.subr.bf16.mxu1 %v2926_v10 }
 0x3bf   : > { %2929 = vmatpush3.bf16.msra.mxu1 %v2926_v10 }
 0x3c2   : > { %2629 = vmatmul.mubr.msk.f32.vlgmr.msra.gmra.mrb[16].mxu1 %vm4298_vm0, %v2005_v11 }
 0x3c3   : > { %2631 = vmatprep.mubr.msk.f32.mxu1 %vm4299_vm11, %v2006_v36  ;;  %vm4320_vm11 = vmmov %vm4298_vm0 }
 0x3c6   : > { %2632 = vmatmul.mubr.msk.f32.gmra.mrb[18].mxu1 %vm4300_vm9, %v2007_v50  ;;  %vm4322_vm9 = vmmov %vm4298_vm0 }
 0x495   : > { %v2630_v41 = vpop.f32.mrb[16].mxu1 }
 0x496   : > { %v1823_v0 = vpop.f32.mrb[17].mxu1  ;;  %v1829_v17 = vadd.f32 %v2630_v41, %v1733_v58 }
 0x497   : > { %v1824_v16 = vadd.f32 %v1823_v0, %v1728_v23 }
 0x498   : > { %v1843_v54 = vmax.f32 %v1829_v17, 0.0 }
 0x499   : > { %v1842_v46 = vmax.f32 %v1824_v16, 0.0  ;;  %v2633_v43 = vpop.f32.mrb[18].mxu1 }
 0x49a   : > { %v1833_v48 = vpop.f32.mrb[19].mxu1  ;;  %v1839_v60 = vadd.f32 %v2633_v43, %v1743_v9 }
 0x49b   : > { %1846 = vxpose.xlu1.b32.start [1/4] (short) %v1842_v46, 128  ;;  %v1834_v59 = vadd.f32 %v1833_v48, %v1738_v44 }
 0x49c   : > { %v1845_v31 = vmax.f32 %v1839_v60, 0.0 }
 0x49d   : > { %v1844_v33 = vmax.f32 %v1834_v59, 0.0 }
 0x49f   : > { %1847 = vxpose.xlu1.b32.cont [2/4] (short) %v1843_v54, 128 }
 0x4a3   : > { %1848 = vxpose.xlu1.b32.cont [3/4] (short) %v1844_v33, 128 }
 0x4a7   : > { %1849 = vxpose.xlu1.b32.end [4/4] (short) %v1845_v31, 128 }
 0x51b   : > { %v1862_v40 = vpop.trf.xlu1 }
 0x51c   : > { %v1878_v6 = vadd.f32 %v2976_v8, %v1862_v40 }
 0x51e   : > { %1894 = vst.msk [vmem:[%s4104_s16] sm:$0xff] %vm4301_vm15, %v1878_v6 }
 0x51f   : > { %v1863_v7 = vpop.trf.xlu1 }
 0x520   : > { %v1879_v30 = vadd.f32 %v1863_v7, %v3061_v4 }
 0x522   : > { %1895 = vst.msk [vmem:[%s4104_s16 + $0x8] sm:$0xff] %vm4302_vm12, %v1879_v30 }
 0x523   : > { %v1864_v13 = vpop.trf.xlu1 }
 0x524   : > { %v1880_v47 = vadd.f32 %v1864_v13, %v3075_v14 }
 0x526   : > { %1896 = vst.msk [vmem:[%s4104_s16 + $0x10] sm:$0xff] %vm4303_vm1, %v1880_v47 }
 0x527   : > { %v1865_v53 = vpop.trf.xlu1 }
 0x528   : > { %v1881_v15 = vadd.f32 %v1865_v53, %v3085_v21 }
 0x52a   : > { %1897 = vst.msk [vmem:[%s4104_s16 + $0x18] sm:$0xff] %vm4304_vm3, %v1881_v15 }
 0x52b   : > { %v1866_v1 = vpop.trf.xlu1 }
 0x52c   : > { %v1882_v18 = vadd.f32 %v1866_v1, %v3094_v24 }
 0x52e   : > { %1898 = vst.msk [vmem:[%s4104_s16 + $0x20] sm:$0xff] %vm4305_vm4, %v1882_v18 }
 0x52f   : > { %v1867_v4 = vpop.trf.xlu1 }
 0x530   : > { %v1883_v63 = vadd.f32 %v1867_v4, %v3111_v32 }
 0x532   : > { %1899 = vst.msk [vmem:[%s4104_s16 + $0x28] sm:$0xff] %vm4306_vm14, %v1883_v63 }
 0x533   : > { %v1868_v14 = vpop.trf.xlu1 }
 0x534   : > { %v1884_v57 = vadd.f32 %v1868_v14, %v3144_v45 }
 0x536   : > { %1900 = vst.msk [vmem:[%s4104_s16 + $0x30] sm:$0xff] %vm4307_vm7, %v1884_v57 }
 0x537   : > { %v1869_v21 = vpop.trf.xlu1 }
 0x538   : > { %v1885_v25 = vadd.f32 %v1869_v21, %v3182_v55 }
 0x53a   : > { %1901 = vst.msk [vmem:[%s4104_s16 + $0x38] sm:$0xff] %vm4308_vm13, %v1885_v25 }
 0x53b   : > { %v1870_v24 = vpop.trf.xlu1 }
 0x53c   : > { %v1886_v56 = vadd.f32 %v1870_v24, %v3217_v61 }
 0x53e   : > { %1902 = vst.msk [vmem:[%s4104_s16 + $0x40] sm:$0xff] %vm4309_vm6, %v1886_v56 }
 0x53f   : > { %v1871_v32 = vpop.trf.xlu1 }
 0x540   : > { %v1887_v27 = vadd.f32 %v1871_v32, %v4310_v29 }
 0x542   : > { %1903 = vst.msk [vmem:[%s4104_s16 + $0x48] sm:$0xff] %vm4311_vm8, %v1887_v27 }
 0x543   : > { %v1872_v45 = vpop.trf.xlu1 }
 0x544   : > { %v1888_v19 = vadd.f32 %v1872_v45, %v4312_v3 }
 0x546   : > { %1904 = vst.msk [vmem:[%s4104_s16 + $0x50] sm:$0xff] %vm4313_vm5, %v1888_v19 }
 0x547   : > { %v1873_v55 = vpop.trf.xlu1 }
 0x548   : > { %v1889_v42 = vadd.f32 %v1873_v55, %v4314_v37 }
 0x54a   : > { %1905 = vst.msk [vmem:[%s4104_s16 + $0x58] sm:$0xff] %vm4315_vm2, %v1889_v42 }
 0x54b   : > { %v1874_v61 = vpop.trf.xlu1 }
 0x54c   : > { %v1890_v38 = vadd.f32 %v1874_v61, %v4316_v49 }
 0x54e   : > { %1906 = vst.msk [vmem:[%s4104_s16 + $0x60] sm:$0xff] %vm4317_vm10, %v1890_v38 }
 0x54f   : > { %v1875_v20 = vpop.trf.xlu1 }
 0x550   : > { %v1891_v22 = vadd.f32 %v1875_v20, %v4318_v12 }
 0x552   : > { %1907 = vst.msk [vmem:[%s4104_s16 + $0x68] sm:$0xff] %vm4298_vm0, %v1891_v22 }
 0x553   : > { %v1876_v35 = vpop.trf.xlu1 }
 0x554   : > { %v1892_v62 = vadd.f32 %v1876_v35, %v4319_v34 }
 0x556   : > { %1908 = vst.msk [vmem:[%s4104_s16 + $0x70] sm:$0xff] %vm4320_vm11, %v1892_v62 }
 0x557   : > { %v1877_v26 = vpop.trf.xlu1 }
 0x558   : > { %v1893_v2 = vadd.f32 %v1877_v26, %v4321_v39 }
 0x55a   : > { %1909 = vst.msk [vmem:[%s4104_s16 + $0x78] sm:$0xff] %vm4322_vm9, %v1893_v2 }
 0x55b PF: > { %s15_s18 = sadd.s32 1, %s2983_s18  }
 0x55c   : > { %p12_p4 = scmp.ge.s32.totalorder %s15_s18, 4  }
 0x55e   :  { %14 = sbr.rel (!%p12_p4) target bundleno = 1 (0x1), region = 80 }

</bundles_post_ra>
